<compile_context>
chip_gen: v6e
topology: v6e:2x2x1
jax: 0.10.0
libtpu: 0.0.40
codegen_flags: <defaults>
</compile_context>

<pallas_src>
import math
import functools

import jax
import jax.numpy as jnp
from jax.experimental import pallas as pl
from jax.experimental.pallas import tpu as pltpu


# ---------------------------------------------------------------------------
# Kernel helpers
# ---------------------------------------------------------------------------
def _layer_norm(v, gamma, beta, eps=1e-5):
    mu = jnp.mean(v, axis=-1, keepdims=True)
    var = jnp.mean((v - mu) ** 2, axis=-1, keepdims=True)
    return (v - mu) * jax.lax.rsqrt(var + eps) * gamma + beta


def _mha_heads(q_in, kv_in, wq_h, wk_h, wv_h, wo_h, bias, num_heads, head_dim):
    """Multi-head attention with heads as a leading batch dimension.

    q_in:  (Sq, D) f32        kv_in: (Sk, D) f32
    wq_h/wk_h/wv_h: (H, D, hd) bf16   wo_h: (H, hd, D) bf16
    bias:  (Sq, Sk) f32 additive mask bias (-1e30 where masked)
    """
    Sq, D = q_in.shape
    Sk = kv_in.shape[0]

    # Broadcast activations over the head axis (cheap), then one batched matmul
    # per projection -- no per-head loop, no lane-axis concatenate.
    qb = jnp.broadcast_to(q_in.astype(jnp.bfloat16), (num_heads, Sq, D))
    kvb = jnp.broadcast_to(kv_in.astype(jnp.bfloat16), (num_heads, Sk, D))

    Qh = jnp.einsum('hsd,hde->hse', qb, wq_h,
                    preferred_element_type=jnp.float32)          # (H, Sq, hd)
    Kh = jnp.einsum('hsd,hde->hse', kvb, wk_h,
                    preferred_element_type=jnp.float32)          # (H, Sk, hd)
    Vh = jnp.einsum('hsd,hde->hse', kvb, wv_h,
                    preferred_element_type=jnp.float32)          # (H, Sk, hd)

    scale = 1.0 / math.sqrt(head_dim)
    Qh = (Qh * scale).astype(jnp.bfloat16)
    Kh = Kh.astype(jnp.bfloat16)

    scores = jnp.einsum('hqe,hke->hqk', Qh, Kh,
                        preferred_element_type=jnp.float32)      # (H, Sq, Sk)
    scores = scores + bias                                       # additive mask
    scores = scores - jnp.max(scores, axis=-1, keepdims=True)
    p = jnp.exp(scores)
    p = p * pl.reciprocal(jnp.sum(p, axis=-1, keepdims=True), approx=True)

    ctx = jnp.einsum('hqk,hke->hqe', p.astype(jnp.bfloat16),
                     Vh.astype(jnp.bfloat16),
                     preferred_element_type=jnp.float32)         # (H, Sq, hd)

    # Output projection per head, then reduce over heads (== concat @ Wo).
    proj = jnp.einsum('hqe,hed->hqd', ctx.astype(jnp.bfloat16), wo_h,
                      preferred_element_type=jnp.float32)        # (H, Sq, D)
    return jnp.sum(proj, axis=0)                                 # (Sq, D)


# ---------------------------------------------------------------------------
# Kernel
# ---------------------------------------------------------------------------
def decoder_layer_kernel(
    # data
    xq_ref, xkv_ref, enc_ref,
    # additive attention biases
    tgt_bias_ref, src_bias_ref,
    # self-attention weights (head-split, bf16)
    sa_wq_ref, sa_wk_ref, sa_wv_ref, sa_wo_ref,
    # cross-attention weights (head-split, bf16)
    ca_wq_ref, ca_wk_ref, ca_wv_ref, ca_wo_ref,
    # feed-forward weights (bf16) / biases (f32)
    ff_w1_ref, ff_b1_ref, ff_w2_ref, ff_b2_ref,
    # layer-norm params (f32, (1, D))
    ln1_g_ref, ln1_b_ref, ln2_g_ref, ln2_b_ref, ln3_g_ref, ln3_b_ref,
    # output
    out_ref,
    *, num_heads, head_dim,
):
    x_q = xq_ref[0]       # (TQ, D) f32  -- query-row tile of the layer input
    x_kv = xkv_ref[0]     # (S, D)  f32  -- full input, self-attention K/V
    enc = enc_ref[0]      # (Se, D) f32

    # --- self attention + residual + LN1 (dropout == identity, eval mode) ---
    sa = _mha_heads(x_q, x_kv,
                    sa_wq_ref[...], sa_wk_ref[...], sa_wv_ref[...], sa_wo_ref[...],
                    tgt_bias_ref[...], num_heads, head_dim)
    h1 = _layer_norm(x_q + sa, ln1_g_ref[...], ln1_b_ref[...])

    # --- cross attention + residual + LN2 ---
    ca = _mha_heads(h1, enc,
                    ca_wq_ref[...], ca_wk_ref[...], ca_wv_ref[...], ca_wo_ref[...],
                    src_bias_ref[...], num_heads, head_dim)
    h2 = _layer_norm(h1 + ca, ln2_g_ref[...], ln2_b_ref[...])

    # --- feed-forward + residual + LN3 ---
    hidden = jnp.dot(h2.astype(jnp.bfloat16), ff_w1_ref[...],
                     preferred_element_type=jnp.float32) + ff_b1_ref[...]
    hidden = jnp.maximum(hidden, 0.0)
    ffn = jnp.dot(hidden.astype(jnp.bfloat16), ff_w2_ref[...],
                  preferred_element_type=jnp.float32) + ff_b2_ref[...]
    out_ref[0] = _layer_norm(h2 + ffn, ln3_g_ref[...], ln3_b_ref[...])


# ---------------------------------------------------------------------------
# Wrapper
# ---------------------------------------------------------------------------
def decoder_layer(x, enc, tgt_mask, src_mask, params, num_heads):
    B, S, D = x.shape
    _, Se, _ = enc.shape
    d_ff = params["ff_w1"].shape[1]
    assert D % num_heads == 0
    head_dim = D // num_heads

    # Query-sequence tile (parallel grid axis). Must keep (8,128)/full-extent rule.
    TQ = S if S <= 128 else 128
    assert S % TQ == 0 and (TQ == S or TQ % 8 == 0)
    n_q = S // TQ

    bf16 = jnp.bfloat16

    # Host-side (free) head split of the projection weights:
    #   wq/wk/wv (D, D) -> (H, D, hd)   (head h uses output columns h*hd:(h+1)*hd)
    #   wo       (D, D) -> (H, hd, D)   (head h uses input rows    h*hd:(h+1)*hd)
    def split_in(w):
        return jnp.transpose(w.reshape(D, num_heads, head_dim), (1, 0, 2)).astype(bf16)

    def split_out(w):
        return w.reshape(num_heads, head_dim, D).astype(bf16)

    sa_wq = split_in(params["sa_wq"]); sa_wk = split_in(params["sa_wk"])
    sa_wv = split_in(params["sa_wv"]); sa_wo = split_out(params["sa_wo"])
    ca_wq = split_in(params["ca_wq"]); ca_wk = split_in(params["ca_wk"])
    ca_wv = split_in(params["ca_wv"]); ca_wo = split_out(params["ca_wo"])
    ff_w1 = params["ff_w1"].astype(bf16)
    ff_w2 = params["ff_w2"].astype(bf16)

    # One-time conversion of the 0/1 masks into additive biases: a single add in
    # the kernel instead of a per-head compare+select, and no inf-inf NaNs.
    neg = jnp.float32(-1e30)
    tgt_bias = jnp.where(tgt_mask == 0, neg, jnp.float32(0.0)).astype(jnp.float32)
    src_bias = jnp.where(src_mask == 0, neg, jnp.float32(0.0)).astype(jnp.float32)

    def const_spec(shape):
        z = tuple(0 for _ in shape)
        return pl.BlockSpec(shape, lambda b, q, _z=z: _z)

    in_specs = [
        pl.BlockSpec((1, TQ, D), lambda b, q: (b, q, 0)),   # x  (query tile)
        pl.BlockSpec((1, S, D),  lambda b, q: (b, 0, 0)),   # x  (full, self-attn K/V)
        pl.BlockSpec((1, Se, D), lambda b, q: (b, 0, 0)),   # encoder output
        pl.BlockSpec((TQ, S),  lambda b, q: (q, 0)),        # tgt additive bias
        pl.BlockSpec((TQ, Se), lambda b, q: (q, 0)),        # src additive bias
        const_spec((num_heads, D, head_dim)),               # sa_wq
        const_spec((num_heads, D, head_dim)),               # sa_wk
        const_spec((num_heads, D, head_dim)),               # sa_wv
        const_spec((num_heads, head_dim, D)),               # sa_wo
        const_spec((num_heads, D, head_dim)),               # ca_wq
        const_spec((num_heads, D, head_dim)),               # ca_wk
        const_spec((num_heads, D, head_dim)),               # ca_wv
        const_spec((num_heads, head_dim, D)),               # ca_wo
        const_spec((D, d_ff)), const_spec((1, d_ff)),
        const_spec((d_ff, D)), const_spec((1, D)),
        const_spec((1, D)), const_spec((1, D)),
        const_spec((1, D)), const_spec((1, D)),
        const_spec((1, D)), const_spec((1, D)),
    ]

    # Advisory cost estimate so XLA can schedule around the custom call.
    flops = B * (
        4 * 2 * S * D * D + 2 * 2 * S * S * D                    # self-attn
        + 2 * 2 * S * D * D + 2 * 2 * Se * D * D + 2 * 2 * S * Se * D  # cross-attn
        + 2 * 2 * S * D * d_ff                                   # FFN
    )
    transcendentals = B * num_heads * S * (S + Se)               # exp in softmax
    bytes_accessed = (
        2 * B * S * D * 4 + B * Se * D * 4                       # x in/out + enc (f32)
        + (8 * D * D + 2 * D * d_ff) * 2                         # bf16 weights
        + (S * S + S * Se) * 4                                   # mask biases
    )

    kernel = functools.partial(decoder_layer_kernel,
                               num_heads=num_heads, head_dim=head_dim)

    return pl.pallas_call(
        kernel,
        out_shape=jax.ShapeDtypeStruct((B, S, D), jnp.float32),
        grid=(B, n_q),
        in_specs=in_specs,
        out_specs=pl.BlockSpec((1, TQ, D), lambda b, q: (b, q, 0)),
        compiler_params=pltpu.CompilerParams(
            dimension_semantics=("parallel", "parallel"),
            vmem_limit_bytes=48 * 1024 * 1024,
        ),
        cost_estimate=pl.CostEstimate(
            flops=int(flops),
            transcendentals=int(transcendentals),
            bytes_accessed=int(bytes_accessed),
        ),
    )(
        x, x, enc, tgt_bias, src_bias,
        sa_wq, sa_wk, sa_wv, sa_wo,
        ca_wq, ca_wk, ca_wv, ca_wo,
        ff_w1, params["ff_b1"], ff_w2, params["ff_b2"],
        params["ln1_g"], params["ln1_b"],
        params["ln2_g"], params["ln2_b"],
        params["ln3_g"], params["ln3_b"],
    )


# ---------------------------------------------------------------------------
# Pure-JAX f32 reference (PyTorch semantics, eval mode) for verification
# ---------------------------------------------------------------------------
def reference(x, enc, tgt_mask, src_mask, params, num_heads):
    D = x.shape[-1]
    hd = D // num_heads

    def ln(v, g, b, eps=1e-5):
        mu = v.mean(-1, keepdims=True)
        var = ((v - mu) ** 2).mean(-1, keepdims=True)
        return (v - mu) / jnp.sqrt(var + eps) * g + b

    def mha(q_in, kv_in, wq, wk, wv, wo, mask):
        B, Sq, _ = q_in.shape
        Sk = kv_in.shape[1]
        Q = (q_in @ wq).reshape(B, Sq, num_heads, hd).transpose(0, 2, 1, 3)
        K = (kv_in @ wk).reshape(B, Sk, num_heads, hd).transpose(0, 2, 1, 3)
        V = (kv_in @ wv).reshape(B, Sk, num_heads, hd).transpose(0, 2, 1, 3)
        s = Q @ K.transpose(0, 1, 3, 2) / math.sqrt(hd)
        s = jnp.where(mask[None, None] == 0, -jnp.inf, s)
        p = jax.nn.softmax(s, axis=-1)
        ctx = (p @ V).transpose(0, 2, 1, 3).reshape(B, Sq, D)
        return ctx @ wo

    h1 = ln(x + mha(x, x, params["sa_wq"], params["sa_wk"], params["sa_wv"],
                    params["sa_wo"], tgt_mask),
            params["ln1_g"], params["ln1_b"])
    h2 = ln(h1 + mha(h1, enc, params["ca_wq"], params["ca_wk"], params["ca_wv"],
                     params["ca_wo"], src_mask),
            params["ln2_g"], params["ln2_b"])
    ffn = jnp.maximum(h2 @ params["ff_w1"] + params["ff_b1"], 0.0) @ params["ff_w2"] + params["ff_b2"]
    return ln(h2 + ffn, params["ln3_g"], params["ln3_b"])


# ---------------------------------------------------------------------------
if __name__ == "__main__":
    B, S, Se, D, H, d_ff = 2, 8, 8, 32, 4, 64

    key = jax.random.PRNGKey(0)
    keys = jax.random.split(key, 16)
    scale = 1.0 / math.sqrt(D)

    params = {
        "sa_wq": jax.random.normal(keys[0], (D, D), jnp.float32) * scale,
        "sa_wk": jax.random.normal(keys[1], (D, D), jnp.float32) * scale,
        "sa_wv": jax.random.normal(keys[2], (D, D), jnp.float32) * scale,
        "sa_wo": jax.random.normal(keys[3], (D, D), jnp.float32) * scale,
        "ca_wq": jax.random.normal(keys[4], (D, D), jnp.float32) * scale,
        "ca_wk": jax.random.normal(keys[5], (D, D), jnp.float32) * scale,
        "ca_wv": jax.random.normal(keys[6], (D, D), jnp.float32) * scale,
        "ca_wo": jax.random.normal(keys[7], (D, D), jnp.float32) * scale,
        "ff_w1": jax.random.normal(keys[8], (D, d_ff), jnp.float32) * scale,
        "ff_b1": jax.random.normal(keys[9], (1, d_ff), jnp.float32) * 0.1,
        "ff_w2": jax.random.normal(keys[10], (d_ff, D), jnp.float32) / math.sqrt(d_ff),
        "ff_b2": jax.random.normal(keys[11], (1, D), jnp.float32) * 0.1,
        "ln1_g": jnp.ones((1, D), jnp.float32), "ln1_b": jnp.zeros((1, D), jnp.float32),
        "ln2_g": jnp.ones((1, D), jnp.float32), "ln2_b": jnp.zeros((1, D), jnp.float32),
        "ln3_g": jnp.ones((1, D), jnp.float32), "ln3_b": jnp.zeros((1, D), jnp.float32),
    }

    x = jax.random.normal(keys[12], (B, S, D), jnp.float32)
    enc = jax.random.normal(keys[13], (B, Se, D), jnp.float32)
    # causal target mask, all-ones source mask (1 = keep, 0 = masked)
    tgt_mask = jnp.tril(jnp.ones((S, S), jnp.float32))
    src_mask = jnp.ones((S, Se), jnp.float32)

    out = decoder_layer(x, enc, tgt_mask, src_mask, params, num_heads=H)
    out = jax.block_until_ready(out)

    ref = reference(x, enc, tgt_mask, src_mask, params, num_heads=H)
    assert out.shape == (B, S, D)
    # Kernel uses bf16 MXU operands (f32 accumulation) vs. a pure-f32 reference:
    # typical max abs diff is ~1e-2 on the LayerNorm-normalized output, so a
    # bf16-appropriate tolerance is used here.
    assert jnp.allclose(out, ref, atol=1e-1, rtol=1e-1), "mismatch vs reference"

    print("KERNEL_OK")
</pallas_src>

<mosaic_0001>
module attributes {stable_mosaic.version = 11 : i64} {
  func.func @decoder_layer_kernel(%arg0: i32, %arg1: i32, %arg2: memref<1x8x32xf32, #tpu.memory_space<vmem>>, %arg3: memref<1x8x32xf32, #tpu.memory_space<vmem>>, %arg4: memref<1x8x32xf32, #tpu.memory_space<vmem>>, %arg5: memref<8x8xf32, #tpu.memory_space<vmem>>, %arg6: memref<8x8xf32, #tpu.memory_space<vmem>>, %arg7: memref<4x32x8xbf16, #tpu.memory_space<vmem>>, %arg8: memref<4x32x8xbf16, #tpu.memory_space<vmem>>, %arg9: memref<4x32x8xbf16, #tpu.memory_space<vmem>>, %arg10: memref<4x8x32xbf16, #tpu.memory_space<vmem>>, %arg11: memref<4x32x8xbf16, #tpu.memory_space<vmem>>, %arg12: memref<4x32x8xbf16, #tpu.memory_space<vmem>>, %arg13: memref<4x32x8xbf16, #tpu.memory_space<vmem>>, %arg14: memref<4x8x32xbf16, #tpu.memory_space<vmem>>, %arg15: memref<32x64xbf16, #tpu.memory_space<vmem>>, %arg16: memref<1x64xf32, #tpu.memory_space<vmem>>, %arg17: memref<64x32xbf16, #tpu.memory_space<vmem>>, %arg18: memref<1x32xf32, #tpu.memory_space<vmem>>, %arg19: memref<1x32xf32, #tpu.memory_space<vmem>>, %arg20: memref<1x32xf32, #tpu.memory_space<vmem>>, %arg21: memref<1x32xf32, #tpu.memory_space<vmem>>, %arg22: memref<1x32xf32, #tpu.memory_space<vmem>>, %arg23: memref<1x32xf32, #tpu.memory_space<vmem>>, %arg24: memref<1x32xf32, #tpu.memory_space<vmem>>, %arg25: memref<1x8x32xf32, #tpu.memory_space<vmem>>) attributes {dimension_semantics = [#tpu.dimension_semantics<parallel>, #tpu.dimension_semantics<parallel>], iteration_bounds = array<i64: 2, 1>, scalar_prefetch = 0 : i64, scratch_operands = 0 : i64, tpu.core_type = #tpu.core_type<tc>, window_params = [{transform_indices = @transform_0, window_bounds = array<i64: 1, 8, 32>}, {transform_indices = @transform_1, window_bounds = array<i64: 1, 8, 32>}, {transform_indices = @transform_2, window_bounds = array<i64: 1, 8, 32>}, {transform_indices = @transform_3, window_bounds = array<i64: 8, 8>}, {transform_indices = @transform_4, window_bounds = array<i64: 8, 8>}, {pipeline_mode = #tpu.pipeline_mode<synchronous>, transform_indices = @transform_5, window_bounds = array<i64: 4, 32, 8>}, {pipeline_mode = #tpu.pipeline_mode<synchronous>, transform_indices = @transform_6, window_bounds = array<i64: 4, 32, 8>}, {pipeline_mode = #tpu.pipeline_mode<synchronous>, transform_indices = @transform_7, window_bounds = array<i64: 4, 32, 8>}, {pipeline_mode = #tpu.pipeline_mode<synchronous>, transform_indices = @transform_8, window_bounds = array<i64: 4, 8, 32>}, {pipeline_mode = #tpu.pipeline_mode<synchronous>, transform_indices = @transform_9, window_bounds = array<i64: 4, 32, 8>}, {pipeline_mode = #tpu.pipeline_mode<synchronous>, transform_indices = @transform_10, window_bounds = array<i64: 4, 32, 8>}, {pipeline_mode = #tpu.pipeline_mode<synchronous>, transform_indices = @transform_11, window_bounds = array<i64: 4, 32, 8>}, {pipeline_mode = #tpu.pipeline_mode<synchronous>, transform_indices = @transform_12, window_bounds = array<i64: 4, 8, 32>}, {pipeline_mode = #tpu.pipeline_mode<synchronous>, transform_indices = @transform_13, window_bounds = array<i64: 32, 64>}, {pipeline_mode = #tpu.pipeline_mode<synchronous>, transform_indices = @transform_14, window_bounds = array<i64: 1, 64>}, {pipeline_mode = #tpu.pipeline_mode<synchronous>, transform_indices = @transform_15, window_bounds = array<i64: 64, 32>}, {pipeline_mode = #tpu.pipeline_mode<synchronous>, transform_indices = @transform_16, window_bounds = array<i64: 1, 32>}, {pipeline_mode = #tpu.pipeline_mode<synchronous>, transform_indices = @transform_17, window_bounds = array<i64: 1, 32>}, {pipeline_mode = #tpu.pipeline_mode<synchronous>, transform_indices = @transform_18, window_bounds = array<i64: 1, 32>}, {pipeline_mode = #tpu.pipeline_mode<synchronous>, transform_indices = @transform_19, window_bounds = array<i64: 1, 32>}, {pipeline_mode = #tpu.pipeline_mode<synchronous>, transform_indices = @transform_20, window_bounds = array<i64: 1, 32>}, {pipeline_mode = #tpu.pipeline_mode<synchronous>, transform_indices = @transform_21, window_bounds = array<i64: 1, 32>}, {pipeline_mode = #tpu.pipeline_mode<synchronous>, transform_indices = @transform_22, window_bounds = array<i64: 1, 32>}, {transform_indices = @transform_23, window_bounds = array<i64: 1, 8, 32>}]} {
    %c0 = arith.constant 0 : index
    %c0_0 = arith.constant 0 : index
    %c0_1 = arith.constant 0 : index
    %0 = vector.load %arg2[%c0, %c0_0, %c0_1] : memref<1x8x32xf32, #tpu.memory_space<vmem>>, vector<1x8x32xf32>
    %1 = vector.shape_cast %0 : vector<1x8x32xf32> to vector<8x32xf32>
    %c0_2 = arith.constant 0 : index
    %c0_3 = arith.constant 0 : index
    %c0_4 = arith.constant 0 : index
    %2 = vector.load %arg3[%c0_2, %c0_3, %c0_4] : memref<1x8x32xf32, #tpu.memory_space<vmem>>, vector<1x8x32xf32>
    %3 = vector.shape_cast %2 : vector<1x8x32xf32> to vector<8x32xf32>
    %c0_5 = arith.constant 0 : index
    %c0_6 = arith.constant 0 : index
    %c0_7 = arith.constant 0 : index
    %4 = vector.load %arg4[%c0_5, %c0_6, %c0_7] : memref<1x8x32xf32, #tpu.memory_space<vmem>>, vector<1x8x32xf32>
    %5 = vector.shape_cast %4 : vector<1x8x32xf32> to vector<8x32xf32>
    %c0_8 = arith.constant 0 : index
    %c0_9 = arith.constant 0 : index
    %c0_10 = arith.constant 0 : index
    %6 = vector.load %arg7[%c0_8, %c0_9, %c0_10] : memref<4x32x8xbf16, #tpu.memory_space<vmem>>, vector<4x32x8xbf16>
    %c0_11 = arith.constant 0 : index
    %c0_12 = arith.constant 0 : index
    %c0_13 = arith.constant 0 : index
    %7 = vector.load %arg8[%c0_11, %c0_12, %c0_13] : memref<4x32x8xbf16, #tpu.memory_space<vmem>>, vector<4x32x8xbf16>
    %c0_14 = arith.constant 0 : index
    %c0_15 = arith.constant 0 : index
    %c0_16 = arith.constant 0 : index
    %8 = vector.load %arg9[%c0_14, %c0_15, %c0_16] : memref<4x32x8xbf16, #tpu.memory_space<vmem>>, vector<4x32x8xbf16>
    %c0_17 = arith.constant 0 : index
    %c0_18 = arith.constant 0 : index
    %c0_19 = arith.constant 0 : index
    %9 = vector.load %arg10[%c0_17, %c0_18, %c0_19] : memref<4x8x32xbf16, #tpu.memory_space<vmem>>, vector<4x8x32xbf16>
    %c0_20 = arith.constant 0 : index
    %c0_21 = arith.constant 0 : index
    %10 = vector.load %arg5[%c0_20, %c0_21] : memref<8x8xf32, #tpu.memory_space<vmem>>, vector<8x8xf32>
    %11 = arith.truncf %1 : vector<8x32xf32> to vector<8x32xbf16>
    %12 = vector.shape_cast %11 : vector<8x32xbf16> to vector<1x8x32xbf16>
    %13 = vector.broadcast %12 : vector<1x8x32xbf16> to vector<4x8x32xbf16>
    %14 = arith.truncf %3 : vector<8x32xf32> to vector<8x32xbf16>
    %15 = vector.shape_cast %14 : vector<8x32xbf16> to vector<1x8x32xbf16>
    %16 = vector.broadcast %15 : vector<1x8x32xbf16> to vector<4x8x32xbf16>
    "tpu.trace_start"() <{level = 10 : i32, message = "hsd,hde->hse"}> : () -> ()
    %cst = arith.constant dense<0.000000e+00> : vector<4x8x8xf32>
    %17 = tpu.matmul %13, %6, %cst {dimension_numbers = #tpu.dot_dimension_numbers<[2], [1], [1], [2], [0, 0, 0, 1, 1, 2], [0], [0]>} : vector<4x8x32xbf16>, vector<4x32x8xbf16>, vector<4x8x8xf32> -> vector<4x8x8xf32>
    %cst_22 = arith.constant dense<0.000000e+00> : vector<4x8x8xf32>
    %18 = tpu.matmul %16, %7, %cst_22 {dimension_numbers = #tpu.dot_dimension_numbers<[2], [1], [1], [2], [0, 0, 0, 1, 1, 2], [0], [0]>} : vector<4x8x32xbf16>, vector<4x32x8xbf16>, vector<4x8x8xf32> -> vector<4x8x8xf32>
    %cst_23 = arith.constant dense<0.000000e+00> : vector<4x8x8xf32>
    %19 = tpu.matmul %16, %8, %cst_23 {dimension_numbers = #tpu.dot_dimension_numbers<[2], [1], [1], [2], [0, 0, 0, 1, 1, 2], [0], [0]>} : vector<4x8x32xbf16>, vector<4x32x8xbf16>, vector<4x8x8xf32> -> vector<4x8x8xf32>
    "tpu.trace_stop"() : () -> ()
    %cst_24 = arith.constant 0.353553385 : f32
    %20 = vector.broadcast %cst_24 : f32 to vector<4x8x8xf32>
    %21 = arith.mulf %17, %20 : vector<4x8x8xf32>
    %22 = arith.truncf %21 : vector<4x8x8xf32> to vector<4x8x8xbf16>
    %23 = arith.truncf %18 : vector<4x8x8xf32> to vector<4x8x8xbf16>
    "tpu.trace_start"() <{level = 10 : i32, message = "hqe,hke->hqk"}> : () -> ()
    %cst_25 = arith.constant dense<0.000000e+00> : vector<4x8x8xf32>
    %24 = tpu.matmul %22, %23, %cst_25 {dimension_numbers = #tpu.dot_dimension_numbers<[2], [2], [1], [1], [0, 0, 0, 1, 1, 1], [0], [0]>} : vector<4x8x8xbf16>, vector<4x8x8xbf16>, vector<4x8x8xf32> -> vector<4x8x8xf32>
    "tpu.trace_stop"() : () -> ()
    %25 = vector.shape_cast %10 : vector<8x8xf32> to vector<1x8x8xf32>
    %26 = vector.broadcast %25 : vector<1x8x8xf32> to vector<4x8x8xf32>
    %27 = arith.addf %24, %26 : vector<4x8x8xf32>
    %cst_26 = arith.constant dense<0xFF800000> : vector<4x8xf32>
    %28 = vector.multi_reduction <maximumf>, %27, %cst_26 [2] : vector<4x8x8xf32> to vector<4x8xf32>
    %29 = vector.shape_cast %28 : vector<4x8xf32> to vector<4x8x1xf32>
    %30 = vector.broadcast %29 : vector<4x8x1xf32> to vector<4x8x8xf32>
    %31 = arith.subf %27, %30 : vector<4x8x8xf32>
    %32 = math.exp %31 : vector<4x8x8xf32>
    %cst_27 = arith.constant dense<0.000000e+00> : vector<4x8xf32>
    %33 = vector.multi_reduction <add>, %32, %cst_27 [2] : vector<4x8x8xf32> to vector<4x8xf32>
    %34 = vector.shape_cast %33 : vector<4x8xf32> to vector<4x8x1xf32>
    %35 = tpu.reciprocal %34 {approx = true} : vector<4x8x1xf32> -> vector<4x8x1xf32>
    %36 = vector.broadcast %35 : vector<4x8x1xf32> to vector<4x8x8xf32>
    %37 = arith.mulf %32, %36 : vector<4x8x8xf32>
    %38 = arith.truncf %37 : vector<4x8x8xf32> to vector<4x8x8xbf16>
    %39 = arith.truncf %19 : vector<4x8x8xf32> to vector<4x8x8xbf16>
    "tpu.trace_start"() <{level = 10 : i32, message = "hqk,hke->hqe"}> : () -> ()
    %cst_28 = arith.constant dense<0.000000e+00> : vector<4x8x8xf32>
    %40 = tpu.matmul %38, %39, %cst_28 {dimension_numbers = #tpu.dot_dimension_numbers<[2], [1], [1], [2], [0, 0, 0, 1, 1, 2], [0], [0]>} : vector<4x8x8xbf16>, vector<4x8x8xbf16>, vector<4x8x8xf32> -> vector<4x8x8xf32>
    "tpu.trace_stop"() : () -> ()
    %41 = arith.truncf %40 : vector<4x8x8xf32> to vector<4x8x8xbf16>
    "tpu.trace_start"() <{level = 10 : i32, message = "hqe,hed->hqd"}> : () -> ()
    %cst_29 = arith.constant dense<0.000000e+00> : vector<4x8x32xf32>
    %42 = tpu.matmul %41, %9, %cst_29 {dimension_numbers = #tpu.dot_dimension_numbers<[2], [1], [1], [2], [0, 0, 0, 1, 1, 2], [0], [0]>} : vector<4x8x8xbf16>, vector<4x8x32xbf16>, vector<4x8x32xf32> -> vector<4x8x32xf32>
    "tpu.trace_stop"() : () -> ()
    %cst_30 = arith.constant dense<0.000000e+00> : vector<8x32xf32>
    %43 = vector.multi_reduction <add>, %42, %cst_30 [0] : vector<4x8x32xf32> to vector<8x32xf32>
    %44 = arith.addf %1, %43 : vector<8x32xf32>
    %c0_31 = arith.constant 0 : index
    %c0_32 = arith.constant 0 : index
    %45 = vector.load %arg19[%c0_31, %c0_32] : memref<1x32xf32, #tpu.memory_space<vmem>>, vector<1x32xf32>
    %c0_33 = arith.constant 0 : index
    %c0_34 = arith.constant 0 : index
    %46 = vector.load %arg20[%c0_33, %c0_34] : memref<1x32xf32, #tpu.memory_space<vmem>>, vector<1x32xf32>
    %cst_35 = arith.constant dense<0.000000e+00> : vector<8xf32>
    %47 = vector.multi_reduction <add>, %44, %cst_35 [1] : vector<8x32xf32> to vector<8xf32>
    %48 = vector.shape_cast %47 : vector<8xf32> to vector<8x1xf32>
    %cst_36 = arith.constant 3.200000e+01 : f32
    %49 = vector.broadcast %cst_36 : f32 to vector<8x1xf32>
    %50 = arith.divf %48, %49 : vector<8x1xf32>
    %51 = vector.broadcast %50 : vector<8x1xf32> to vector<8x32xf32>
    %52 = arith.subf %44, %51 : vector<8x32xf32>
    %53 = arith.mulf %52, %52 : vector<8x32xf32>
    %cst_37 = arith.constant dense<0.000000e+00> : vector<8xf32>
    %54 = vector.multi_reduction <add>, %53, %cst_37 [1] : vector<8x32xf32> to vector<8xf32>
    %55 = vector.shape_cast %54 : vector<8xf32> to vector<8x1xf32>
    %cst_38 = arith.constant 3.200000e+01 : f32
    %56 = vector.broadcast %cst_38 : f32 to vector<8x1xf32>
    %57 = arith.divf %55, %56 : vector<8x1xf32>
    %58 = vector.broadcast %50 : vector<8x1xf32> to vector<8x32xf32>
    %59 = arith.subf %44, %58 : vector<8x32xf32>
    %cst_39 = arith.constant 9.99999974E-6 : f32
    %60 = vector.broadcast %cst_39 : f32 to vector<8x1xf32>
    %61 = arith.addf %57, %60 : vector<8x1xf32>
    %62 = math.rsqrt %61 : vector<8x1xf32>
    %63 = vector.broadcast %62 : vector<8x1xf32> to vector<8x32xf32>
    %64 = arith.mulf %59, %63 : vector<8x32xf32>
    %65 = vector.broadcast %45 : vector<1x32xf32> to vector<8x32xf32>
    %66 = arith.mulf %64, %65 : vector<8x32xf32>
    %67 = vector.broadcast %46 : vector<1x32xf32> to vector<8x32xf32>
    %68 = arith.addf %66, %67 : vector<8x32xf32>
    %c0_40 = arith.constant 0 : index
    %c0_41 = arith.constant 0 : index
    %c0_42 = arith.constant 0 : index
    %69 = vector.load %arg11[%c0_40, %c0_41, %c0_42] : memref<4x32x8xbf16, #tpu.memory_space<vmem>>, vector<4x32x8xbf16>
    %c0_43 = arith.constant 0 : index
    %c0_44 = arith.constant 0 : index
    %c0_45 = arith.constant 0 : index
    %70 = vector.load %arg12[%c0_43, %c0_44, %c0_45] : memref<4x32x8xbf16, #tpu.memory_space<vmem>>, vector<4x32x8xbf16>
    %c0_46 = arith.constant 0 : index
    %c0_47 = arith.constant 0 : index
    %c0_48 = arith.constant 0 : index
    %71 = vector.load %arg13[%c0_46, %c0_47, %c0_48] : memref<4x32x8xbf16, #tpu.memory_space<vmem>>, vector<4x32x8xbf16>
    %c0_49 = arith.constant 0 : index
    %c0_50 = arith.constant 0 : index
    %c0_51 = arith.constant 0 : index
    %72 = vector.load %arg14[%c0_49, %c0_50, %c0_51] : memref<4x8x32xbf16, #tpu.memory_space<vmem>>, vector<4x8x32xbf16>
    %c0_52 = arith.constant 0 : index
    %c0_53 = arith.constant 0 : index
    %73 = vector.load %arg6[%c0_52, %c0_53] : memref<8x8xf32, #tpu.memory_space<vmem>>, vector<8x8xf32>
    %74 = arith.truncf %68 : vector<8x32xf32> to vector<8x32xbf16>
    %75 = vector.shape_cast %74 : vector<8x32xbf16> to vector<1x8x32xbf16>
    %76 = vector.broadcast %75 : vector<1x8x32xbf16> to vector<4x8x32xbf16>
    %77 = arith.truncf %5 : vector<8x32xf32> to vector<8x32xbf16>
    %78 = vector.shape_cast %77 : vector<8x32xbf16> to vector<1x8x32xbf16>
    %79 = vector.broadcast %78 : vector<1x8x32xbf16> to vector<4x8x32xbf16>
    "tpu.trace_start"() <{level = 10 : i32, message = "hsd,hde->hse"}> : () -> ()
    %cst_54 = arith.constant dense<0.000000e+00> : vector<4x8x8xf32>
    %80 = tpu.matmul %76, %69, %cst_54 {dimension_numbers = #tpu.dot_dimension_numbers<[2], [1], [1], [2], [0, 0, 0, 1, 1, 2], [0], [0]>} : vector<4x8x32xbf16>, vector<4x32x8xbf16>, vector<4x8x8xf32> -> vector<4x8x8xf32>
    %cst_55 = arith.constant dense<0.000000e+00> : vector<4x8x8xf32>
    %81 = tpu.matmul %79, %70, %cst_55 {dimension_numbers = #tpu.dot_dimension_numbers<[2], [1], [1], [2], [0, 0, 0, 1, 1, 2], [0], [0]>} : vector<4x8x32xbf16>, vector<4x32x8xbf16>, vector<4x8x8xf32> -> vector<4x8x8xf32>
    %cst_56 = arith.constant dense<0.000000e+00> : vector<4x8x8xf32>
    %82 = tpu.matmul %79, %71, %cst_56 {dimension_numbers = #tpu.dot_dimension_numbers<[2], [1], [1], [2], [0, 0, 0, 1, 1, 2], [0], [0]>} : vector<4x8x32xbf16>, vector<4x32x8xbf16>, vector<4x8x8xf32> -> vector<4x8x8xf32>
    "tpu.trace_stop"() : () -> ()
    %cst_57 = arith.constant 0.353553385 : f32
    %83 = vector.broadcast %cst_57 : f32 to vector<4x8x8xf32>
    %84 = arith.mulf %80, %83 : vector<4x8x8xf32>
    %85 = arith.truncf %84 : vector<4x8x8xf32> to vector<4x8x8xbf16>
    %86 = arith.truncf %81 : vector<4x8x8xf32> to vector<4x8x8xbf16>
    "tpu.trace_start"() <{level = 10 : i32, message = "hqe,hke->hqk"}> : () -> ()
    %cst_58 = arith.constant dense<0.000000e+00> : vector<4x8x8xf32>
    %87 = tpu.matmul %85, %86, %cst_58 {dimension_numbers = #tpu.dot_dimension_numbers<[2], [2], [1], [1], [0, 0, 0, 1, 1, 1], [0], [0]>} : vector<4x8x8xbf16>, vector<4x8x8xbf16>, vector<4x8x8xf32> -> vector<4x8x8xf32>
    "tpu.trace_stop"() : () -> ()
    %88 = vector.shape_cast %73 : vector<8x8xf32> to vector<1x8x8xf32>
    %89 = vector.broadcast %88 : vector<1x8x8xf32> to vector<4x8x8xf32>
    %90 = arith.addf %87, %89 : vector<4x8x8xf32>
    %cst_59 = arith.constant dense<0xFF800000> : vector<4x8xf32>
    %91 = vector.multi_reduction <maximumf>, %90, %cst_59 [2] : vector<4x8x8xf32> to vector<4x8xf32>
    %92 = vector.shape_cast %91 : vector<4x8xf32> to vector<4x8x1xf32>
    %93 = vector.broadcast %92 : vector<4x8x1xf32> to vector<4x8x8xf32>
    %94 = arith.subf %90, %93 : vector<4x8x8xf32>
    %95 = math.exp %94 : vector<4x8x8xf32>
    %cst_60 = arith.constant dense<0.000000e+00> : vector<4x8xf32>
    %96 = vector.multi_reduction <add>, %95, %cst_60 [2] : vector<4x8x8xf32> to vector<4x8xf32>
    %97 = vector.shape_cast %96 : vector<4x8xf32> to vector<4x8x1xf32>
    %98 = tpu.reciprocal %97 {approx = true} : vector<4x8x1xf32> -> vector<4x8x1xf32>
    %99 = vector.broadcast %98 : vector<4x8x1xf32> to vector<4x8x8xf32>
    %100 = arith.mulf %95, %99 : vector<4x8x8xf32>
    %101 = arith.truncf %100 : vector<4x8x8xf32> to vector<4x8x8xbf16>
    %102 = arith.truncf %82 : vector<4x8x8xf32> to vector<4x8x8xbf16>
    "tpu.trace_start"() <{level = 10 : i32, message = "hqk,hke->hqe"}> : () -> ()
    %cst_61 = arith.constant dense<0.000000e+00> : vector<4x8x8xf32>
    %103 = tpu.matmul %101, %102, %cst_61 {dimension_numbers = #tpu.dot_dimension_numbers<[2], [1], [1], [2], [0, 0, 0, 1, 1, 2], [0], [0]>} : vector<4x8x8xbf16>, vector<4x8x8xbf16>, vector<4x8x8xf32> -> vector<4x8x8xf32>
    "tpu.trace_stop"() : () -> ()
    %104 = arith.truncf %103 : vector<4x8x8xf32> to vector<4x8x8xbf16>
    "tpu.trace_start"() <{level = 10 : i32, message = "hqe,hed->hqd"}> : () -> ()
    %cst_62 = arith.constant dense<0.000000e+00> : vector<4x8x32xf32>
    %105 = tpu.matmul %104, %72, %cst_62 {dimension_numbers = #tpu.dot_dimension_numbers<[2], [1], [1], [2], [0, 0, 0, 1, 1, 2], [0], [0]>} : vector<4x8x8xbf16>, vector<4x8x32xbf16>, vector<4x8x32xf32> -> vector<4x8x32xf32>
    "tpu.trace_stop"() : () -> ()
    %cst_63 = arith.constant dense<0.000000e+00> : vector<8x32xf32>
    %106 = vector.multi_reduction <add>, %105, %cst_63 [0] : vector<4x8x32xf32> to vector<8x32xf32>
    %107 = arith.addf %68, %106 : vector<8x32xf32>
    %c0_64 = arith.constant 0 : index
    %c0_65 = arith.constant 0 : index
    %108 = vector.load %arg21[%c0_64, %c0_65] : memref<1x32xf32, #tpu.memory_space<vmem>>, vector<1x32xf32>
    %c0_66 = arith.constant 0 : index
    %c0_67 = arith.constant 0 : index
    %109 = vector.load %arg22[%c0_66, %c0_67] : memref<1x32xf32, #tpu.memory_space<vmem>>, vector<1x32xf32>
    %cst_68 = arith.constant dense<0.000000e+00> : vector<8xf32>
    %110 = vector.multi_reduction <add>, %107, %cst_68 [1] : vector<8x32xf32> to vector<8xf32>
    %111 = vector.shape_cast %110 : vector<8xf32> to vector<8x1xf32>
    %cst_69 = arith.constant 3.200000e+01 : f32
    %112 = vector.broadcast %cst_69 : f32 to vector<8x1xf32>
    %113 = arith.divf %111, %112 : vector<8x1xf32>
    %114 = vector.broadcast %113 : vector<8x1xf32> to vector<8x32xf32>
    %115 = arith.subf %107, %114 : vector<8x32xf32>
    %116 = arith.mulf %115, %115 : vector<8x32xf32>
    %cst_70 = arith.constant dense<0.000000e+00> : vector<8xf32>
    %117 = vector.multi_reduction <add>, %116, %cst_70 [1] : vector<8x32xf32> to vector<8xf32>
    %118 = vector.shape_cast %117 : vector<8xf32> to vector<8x1xf32>
    %cst_71 = arith.constant 3.200000e+01 : f32
    %119 = vector.broadcast %cst_71 : f32 to vector<8x1xf32>
    %120 = arith.divf %118, %119 : vector<8x1xf32>
    %121 = vector.broadcast %113 : vector<8x1xf32> to vector<8x32xf32>
    %122 = arith.subf %107, %121 : vector<8x32xf32>
    %cst_72 = arith.constant 9.99999974E-6 : f32
    %123 = vector.broadcast %cst_72 : f32 to vector<8x1xf32>
    %124 = arith.addf %120, %123 : vector<8x1xf32>
    %125 = math.rsqrt %124 : vector<8x1xf32>
    %126 = vector.broadcast %125 : vector<8x1xf32> to vector<8x32xf32>
    %127 = arith.mulf %122, %126 : vector<8x32xf32>
    %128 = vector.broadcast %108 : vector<1x32xf32> to vector<8x32xf32>
    %129 = arith.mulf %127, %128 : vector<8x32xf32>
    %130 = vector.broadcast %109 : vector<1x32xf32> to vector<8x32xf32>
    %131 = arith.addf %129, %130 : vector<8x32xf32>
    %132 = arith.truncf %131 : vector<8x32xf32> to vector<8x32xbf16>
    %c0_73 = arith.constant 0 : index
    %c0_74 = arith.constant 0 : index
    %133 = vector.load %arg15[%c0_73, %c0_74] : memref<32x64xbf16, #tpu.memory_space<vmem>>, vector<32x64xbf16>
    %cst_75 = arith.constant dense<0.000000e+00> : vector<8x64xf32>
    %134 = tpu.matmul %132, %133, %cst_75 {dimension_numbers = #tpu.dot_dimension_numbers<[1], [0], [0], [1], [0, 0, 1, 1], [], []>} : vector<8x32xbf16>, vector<32x64xbf16>, vector<8x64xf32> -> vector<8x64xf32>
    %c0_76 = arith.constant 0 : index
    %c0_77 = arith.constant 0 : index
    %135 = vector.load %arg16[%c0_76, %c0_77] : memref<1x64xf32, #tpu.memory_space<vmem>>, vector<1x64xf32>
    %136 = vector.broadcast %135 : vector<1x64xf32> to vector<8x64xf32>
    %137 = arith.addf %134, %136 : vector<8x64xf32>
    %cst_78 = arith.constant 0.000000e+00 : f32
    %138 = vector.broadcast %cst_78 : f32 to vector<8x64xf32>
    %139 = arith.maximumf %137, %138 : vector<8x64xf32>
    %140 = arith.truncf %139 : vector<8x64xf32> to vector<8x64xbf16>
    %c0_79 = arith.constant 0 : index
    %c0_80 = arith.constant 0 : index
    %141 = vector.load %arg17[%c0_79, %c0_80] : memref<64x32xbf16, #tpu.memory_space<vmem>>, vector<64x32xbf16>
    %cst_81 = arith.constant dense<0.000000e+00> : vector<8x32xf32>
    %142 = tpu.matmul %140, %141, %cst_81 {dimension_numbers = #tpu.dot_dimension_numbers<[1], [0], [0], [1], [0, 0, 1, 1], [], []>} : vector<8x64xbf16>, vector<64x32xbf16>, vector<8x32xf32> -> vector<8x32xf32>
    %c0_82 = arith.constant 0 : index
    %c0_83 = arith.constant 0 : index
    %143 = vector.load %arg18[%c0_82, %c0_83] : memref<1x32xf32, #tpu.memory_space<vmem>>, vector<1x32xf32>
    %144 = vector.broadcast %143 : vector<1x32xf32> to vector<8x32xf32>
    %145 = arith.addf %142, %144 : vector<8x32xf32>
    %146 = arith.addf %131, %145 : vector<8x32xf32>
    %c0_84 = arith.constant 0 : index
    %c0_85 = arith.constant 0 : index
    %147 = vector.load %arg23[%c0_84, %c0_85] : memref<1x32xf32, #tpu.memory_space<vmem>>, vector<1x32xf32>
    %c0_86 = arith.constant 0 : index
    %c0_87 = arith.constant 0 : index
    %148 = vector.load %arg24[%c0_86, %c0_87] : memref<1x32xf32, #tpu.memory_space<vmem>>, vector<1x32xf32>
    %cst_88 = arith.constant dense<0.000000e+00> : vector<8xf32>
    %149 = vector.multi_reduction <add>, %146, %cst_88 [1] : vector<8x32xf32> to vector<8xf32>
    %150 = vector.shape_cast %149 : vector<8xf32> to vector<8x1xf32>
    %cst_89 = arith.constant 3.200000e+01 : f32
    %151 = vector.broadcast %cst_89 : f32 to vector<8x1xf32>
    %152 = arith.divf %150, %151 : vector<8x1xf32>
    %153 = vector.broadcast %152 : vector<8x1xf32> to vector<8x32xf32>
    %154 = arith.subf %146, %153 : vector<8x32xf32>
    %155 = arith.mulf %154, %154 : vector<8x32xf32>
    %cst_90 = arith.constant dense<0.000000e+00> : vector<8xf32>
    %156 = vector.multi_reduction <add>, %155, %cst_90 [1] : vector<8x32xf32> to vector<8xf32>
    %157 = vector.shape_cast %156 : vector<8xf32> to vector<8x1xf32>
    %cst_91 = arith.constant 3.200000e+01 : f32
    %158 = vector.broadcast %cst_91 : f32 to vector<8x1xf32>
    %159 = arith.divf %157, %158 : vector<8x1xf32>
    %160 = vector.broadcast %152 : vector<8x1xf32> to vector<8x32xf32>
    %161 = arith.subf %146, %160 : vector<8x32xf32>
    %cst_92 = arith.constant 9.99999974E-6 : f32
    %162 = vector.broadcast %cst_92 : f32 to vector<8x1xf32>
    %163 = arith.addf %159, %162 : vector<8x1xf32>
    %164 = math.rsqrt %163 : vector<8x1xf32>
    %165 = vector.broadcast %164 : vector<8x1xf32> to vector<8x32xf32>
    %166 = arith.mulf %161, %165 : vector<8x32xf32>
    %167 = vector.broadcast %147 : vector<1x32xf32> to vector<8x32xf32>
    %168 = arith.mulf %166, %167 : vector<8x32xf32>
    %169 = vector.broadcast %148 : vector<1x32xf32> to vector<8x32xf32>
    %170 = arith.addf %168, %169 : vector<8x32xf32>
    %c0_93 = arith.constant 0 : index
    %c0_94 = arith.constant 0 : index
    %c0_95 = arith.constant 0 : index
    %171 = vector.load %arg25[%c0_93, %c0_94, %c0_95] : memref<1x8x32xf32, #tpu.memory_space<vmem>>, vector<1x8x32xf32>
    %172 = vector.shape_cast %171 : vector<1x8x32xf32> to vector<8x32xf32>
    %173 = vector.shape_cast %170 : vector<8x32xf32> to vector<1x8x32xf32>
    tpu.vector_store %arg25[%c0_93, %c0_94, %c0_95], %173 {strides = array<i32>} : memref<1x8x32xf32, #tpu.memory_space<vmem>>, vector<1x8x32xf32>,
    return
  }
  func.func @transform_0(%arg0: i32, %arg1: i32) -> (i32, i32, i32) {
    %c0_i32 = arith.constant 0 : i32
    %c0_i32_0 = arith.constant 0 : i32
    return %arg0, %arg1, %c0_i32 : i32, i32, i32
  }
  func.func @transform_1(%arg0: i32, %arg1: i32) -> (i32, i32, i32) {
    %c0_i32 = arith.constant 0 : i32
    %c0_i32_0 = arith.constant 0 : i32
    %c0_i32_1 = arith.constant 0 : i32
    return %arg0, %c0_i32, %c0_i32_0 : i32, i32, i32
  }
  func.func @transform_2(%arg0: i32, %arg1: i32) -> (i32, i32, i32) {
    %c0_i32 = arith.constant 0 : i32
    %c0_i32_0 = arith.constant 0 : i32
    %c0_i32_1 = arith.constant 0 : i32
    return %arg0, %c0_i32, %c0_i32_0 : i32, i32, i32
  }
  func.func @transform_3(%arg0: i32, %arg1: i32) -> (i32, i32) {
    %c0_i32 = arith.constant 0 : i32
    %c0_i32_0 = arith.constant 0 : i32
    return %arg1, %c0_i32 : i32, i32
  }
  func.func @transform_4(%arg0: i32, %arg1: i32) -> (i32, i32) {
    %c0_i32 = arith.constant 0 : i32
    %c0_i32_0 = arith.constant 0 : i32
    return %arg1, %c0_i32 : i32, i32
  }
  func.func @transform_5(%arg0: i32, %arg1: i32) -> (i32, i32, i32) {
    %c0_i32 = arith.constant 0 : i32
    %c0_i32_0 = arith.constant 0 : i32
    %c0_i32_1 = arith.constant 0 : i32
    %c0_i32_2 = arith.constant 0 : i32
    return %c0_i32, %c0_i32_0, %c0_i32_1 : i32, i32, i32
  }
  func.func @transform_6(%arg0: i32, %arg1: i32) -> (i32, i32, i32) {
    %c0_i32 = arith.constant 0 : i32
    %c0_i32_0 = arith.constant 0 : i32
    %c0_i32_1 = arith.constant 0 : i32
    %c0_i32_2 = arith.constant 0 : i32
    return %c0_i32, %c0_i32_0, %c0_i32_1 : i32, i32, i32
  }
  func.func @transform_7(%arg0: i32, %arg1: i32) -> (i32, i32, i32) {
    %c0_i32 = arith.constant 0 : i32
    %c0_i32_0 = arith.constant 0 : i32
    %c0_i32_1 = arith.constant 0 : i32
    %c0_i32_2 = arith.constant 0 : i32
    return %c0_i32, %c0_i32_0, %c0_i32_1 : i32, i32, i32
  }
  func.func @transform_8(%arg0: i32, %arg1: i32) -> (i32, i32, i32) {
    %c0_i32 = arith.constant 0 : i32
    %c0_i32_0 = arith.constant 0 : i32
    %c0_i32_1 = arith.constant 0 : i32
    %c0_i32_2 = arith.constant 0 : i32
    return %c0_i32, %c0_i32_0, %c0_i32_1 : i32, i32, i32
  }
  func.func @transform_9(%arg0: i32, %arg1: i32) -> (i32, i32, i32) {
    %c0_i32 = arith.constant 0 : i32
    %c0_i32_0 = arith.constant 0 : i32
    %c0_i32_1 = arith.constant 0 : i32
    %c0_i32_2 = arith.constant 0 : i32
    return %c0_i32, %c0_i32_0, %c0_i32_1 : i32, i32, i32
  }
  func.func @transform_10(%arg0: i32, %arg1: i32) -> (i32, i32, i32) {
    %c0_i32 = arith.constant 0 : i32
    %c0_i32_0 = arith.constant 0 : i32
    %c0_i32_1 = arith.constant 0 : i32
    %c0_i32_2 = arith.constant 0 : i32
    return %c0_i32, %c0_i32_0, %c0_i32_1 : i32, i32, i32
  }
  func.func @transform_11(%arg0: i32, %arg1: i32) -> (i32, i32, i32) {
    %c0_i32 = arith.constant 0 : i32
    %c0_i32_0 = arith.constant 0 : i32
    %c0_i32_1 = arith.constant 0 : i32
    %c0_i32_2 = arith.constant 0 : i32
    return %c0_i32, %c0_i32_0, %c0_i32_1 : i32, i32, i32
  }
  func.func @transform_12(%arg0: i32, %arg1: i32) -> (i32, i32, i32) {
    %c0_i32 = arith.constant 0 : i32
    %c0_i32_0 = arith.constant 0 : i32
    %c0_i32_1 = arith.constant 0 : i32
    %c0_i32_2 = arith.constant 0 : i32
    return %c0_i32, %c0_i32_0, %c0_i32_1 : i32, i32, i32
  }
  func.func @transform_13(%arg0: i32, %arg1: i32) -> (i32, i32) {
    %c0_i32 = arith.constant 0 : i32
    %c0_i32_0 = arith.constant 0 : i32
    %c0_i32_1 = arith.constant 0 : i32
    return %c0_i32, %c0_i32_0 : i32, i32
  }
  func.func @transform_14(%arg0: i32, %arg1: i32) -> (i32, i32) {
    %c0_i32 = arith.constant 0 : i32
    %c0_i32_0 = arith.constant 0 : i32
    %c0_i32_1 = arith.constant 0 : i32
    return %c0_i32, %c0_i32_0 : i32, i32
  }
  func.func @transform_15(%arg0: i32, %arg1: i32) -> (i32, i32) {
    %c0_i32 = arith.constant 0 : i32
    %c0_i32_0 = arith.constant 0 : i32
    %c0_i32_1 = arith.constant 0 : i32
    return %c0_i32, %c0_i32_0 : i32, i32
  }
  func.func @transform_16(%arg0: i32, %arg1: i32) -> (i32, i32) {
    %c0_i32 = arith.constant 0 : i32
    %c0_i32_0 = arith.constant 0 : i32
    %c0_i32_1 = arith.constant 0 : i32
    return %c0_i32, %c0_i32_0 : i32, i32
  }
  func.func @transform_17(%arg0: i32, %arg1: i32) -> (i32, i32) {
    %c0_i32 = arith.constant 0 : i32
    %c0_i32_0 = arith.constant 0 : i32
    %c0_i32_1 = arith.constant 0 : i32
    return %c0_i32, %c0_i32_0 : i32, i32
  }
  func.func @transform_18(%arg0: i32, %arg1: i32) -> (i32, i32) {
    %c0_i32 = arith.constant 0 : i32
    %c0_i32_0 = arith.constant 0 : i32
    %c0_i32_1 = arith.constant 0 : i32
    return %c0_i32, %c0_i32_0 : i32, i32
  }
  func.func @transform_19(%arg0: i32, %arg1: i32) -> (i32, i32) {
    %c0_i32 = arith.constant 0 : i32
    %c0_i32_0 = arith.constant 0 : i32
    %c0_i32_1 = arith.constant 0 : i32
    return %c0_i32, %c0_i32_0 : i32, i32
  }
  func.func @transform_20(%arg0: i32, %arg1: i32) -> (i32, i32) {
    %c0_i32 = arith.constant 0 : i32
    %c0_i32_0 = arith.constant 0 : i32
    %c0_i32_1 = arith.constant 0 : i32
    return %c0_i32, %c0_i32_0 : i32, i32
  }
  func.func @transform_21(%arg0: i32, %arg1: i32) -> (i32, i32) {
    %c0_i32 = arith.constant 0 : i32
    %c0_i32_0 = arith.constant 0 : i32
    %c0_i32_1 = arith.constant 0 : i32
    return %c0_i32, %c0_i32_0 : i32, i32
  }
  func.func @transform_22(%arg0: i32, %arg1: i32) -> (i32, i32) {
    %c0_i32 = arith.constant 0 : i32
    %c0_i32_0 = arith.constant 0 : i32
    %c0_i32_1 = arith.constant 0 : i32
    return %c0_i32, %c0_i32_0 : i32, i32
  }
  func.func @transform_23(%arg0: i32, %arg1: i32) -> (i32, i32, i32) {
    %c0_i32 = arith.constant 0 : i32
    %c0_i32_0 = arith.constant 0 : i32
    return %arg0, %arg1, %c0_i32 : i32, i32, i32
  }
}

</mosaic_0001>

<bundles_post_ra>
// kernel: tpu_custom_call.1
= control target key start
LH: loop header
LB: loop body
LE: loop exit
PB: predicated region body
PF: predicated region fallthrough
CT: control target
= control target key end

     0   :  { %s5409_s0 = inlined_call_operand.vmem [shape: f32[2,8,32], index: 0, kind: input, shape index: {}]   ;;  %s5410_s1 = inlined_call_operand.vmem [shape: f32[2,8,32], index: 1, kind: input, shape index: {}]   ;;  %s5411_s2 = inlined_call_operand.vmem [shape: f32[2,8,32], index: 2, kind: input, shape index: {}]   ;;  %s5412_s3 = inlined_call_operand.vmem [shape: f32[8,8], index: 3, kind: input, shape index: {}]   ;;  %s5413_s4 = inlined_call_operand.vmem [shape: f32[8,8], index: 4, kind: input, shape index: {}]   ;;  %s5414_s5 = inlined_call_operand.vmem [shape: bf16[4,32,8], index: 5, kind: input, shape index: {}]   ;;  %s5415_s6 = inlined_call_operand.vmem [shape: bf16[4,32,8], index: 6, kind: input, shape index: {}]   ;;  %s5416_s7 = inlined_call_operand.vmem [shape: bf16[4,32,8], index: 7, kind: input, shape index: {}]   ;;  %s5417_s8 = inlined_call_operand.vmem [shape: bf16[4,8,32], index: 8, kind: input, shape index: {}]   ;;  %s5418_s9 = inlined_call_operand.vmem [shape: bf16[4,32,8], index: 9, kind: input, shape index: {}]   ;;  %s5419_s10 = inlined_call_operand.vmem [shape: bf16[4,32,8], index: 10, kind: input, shape index: {}]   ;;  %s5420_s11 = inlined_call_operand.vmem [shape: bf16[4,32,8], index: 11, kind: input, shape index: {}]   ;;  %s5421_s12 = inlined_call_operand.vmem [shape: bf16[4,8,32], index: 12, kind: input, shape index: {}]   ;;  %s5422_s13 = inlined_call_operand.vmem [shape: bf16[32,64], index: 13, kind: input, shape index: {}]   ;;  %s5423_s14 = inlined_call_operand.vmem [shape: f32[1,64], index: 14, kind: input, shape index: {}]   ;;  %s5424_s15 = inlined_call_operand.vmem [shape: bf16[64,32], index: 15, kind: input, shape index: {}]   ;;  %s5425_s16 = inlined_call_operand.vmem [shape: f32[1,32], index: 16, kind: input, shape index: {}]   ;;  %s5426_s17 = inlined_call_operand.vmem [shape: f32[1,32], index: 17, kind: input, shape index: {}]   ;;  %s5427_s18 = inlined_call_operand.vmem [shape: f32[1,32], index: 18, kind: input, shape index: {}]   ;;  %s5428_s19 = inlined_call_operand.vmem [shape: f32[1,32], index: 19, kind: input, shape index: {}]   ;;  %s5429_s20 = inlined_call_operand.vmem [shape: f32[1,32], index: 20, kind: input, shape index: {}]   ;;  %s5430_s21 = inlined_call_operand.vmem [shape: f32[1,32], index: 21, kind: input, shape index: {}]   ;;  %s5431_s22 = inlined_call_operand.vmem [shape: f32[1,32], index: 22, kind: input, shape index: {}]   ;;  %s5432_s23 = inlined_call_operand.hbm [shape: f32[2,8,32], index: 23, kind: output, shape index: {}]  }
   0x1   :  { %5445 = sst [smem:[#allocation12_spill]] %s5409_s0 }
   0x2   :  { %5446 = sst [smem:[#allocation13_spill]] %s5410_s1 }
   0x3   :  { %5447 = sst [smem:[#allocation14_spill]] %s5411_s2 }
   0x4   :  { %5448 = sst [smem:[#allocation15_spill]] %s5412_s3 }
   0x5   :  { %5449 = sst [smem:[#allocation16_spill]] %s5413_s4 }
   0x6   :  { %5450 = sst [smem:[#allocation17_spill]] %s5414_s5 }
   0x7   :  { %5451 = sst [smem:[#allocation18_spill]] %s5415_s6 }
   0x8   :  { %5452 = sst [smem:[#allocation19_spill]] %s5416_s7 }
   0x9   :  { %5453 = sst [smem:[#allocation20_spill]] %s5417_s8 }
   0xa   :  { %5454 = sst [smem:[#allocation21_spill]] %s5418_s9 }
   0xb   :  { %5455 = sst [smem:[#allocation22_spill]] %s5419_s10 }
   0xc   :  { %5456 = sst [smem:[#allocation23_spill]] %s5432_s23 }
   0xd   :  { %28 = vsyncpa [#allocation3], 0 }
   0xe   :  { %30 = vsyncpa [#allocation3 + $0x1], 0  ;;  %s4775_s4 = smov 0   ;;  %s4777_s30 = smov 0  }
   0xf   :  { %s4779_s24 = smov 0   ;;  %s4781_s25 = smov 0  }
  0x10   :  { %s4783_s5 = smov 0   ;;  %s4785_s1 = smov 0  }
  0x11 LB: > { %5457 = sst [smem:[#allocation5_spill]] %s4630_s4  ;;  %s3814_s26 = sadd.s32 4294967295, %s4650_s1   ;;  %s4650_s1 = sphi %s4785_s1, %s36_s1   ;;  %s4646_s5 = sphi %s4783_s5, %s5487_s5   ;;  %s4642_s25 = sphi %s4781_s25, %s5486_s25   ;;  %s4638_s24 = sphi %s4779_s24, %s5485_s24   ;;  %s4634_s30 = sphi %s4777_s30, %s5489_s30   ;;  %s4630_s4 = sphi %s4775_s4, %s5488_s4  }
  0x12   : > { %5458 = sst [smem:[#allocation6_spill]] %s4638_s24  ;;  %s3815_s2 = sadd.s32 4294967294, %s4650_s1  }
  0x13   : > { %5459 = sst [smem:[#allocation7_spill]] %s4646_s5  ;;  %s48_s6 = sadd.s32 1, %s4646_s5 }
  0x14   : > { %5460 = sst [smem:[#allocation8_spill]] %s4650_s1  ;;  %s567_s27 = sadd.s32 1, %s4638_s24 }
  0x15   : > { %p50_p0 = scmp.ge.s32.totalorder %s48_s6, 2  ;;  %p577_p1 = scmp.ne.s32.totalorder %s4638_s24, %s4634_s30 }
  0x16   : > { %p578_p2 = scmp.eq.s32.totalorder %s3814_s26, 1  ;;  %p583_p3 = scmp.ne.s32.totalorder %s4634_s30, %s4630_s4 }
  0x17   : > { %s5491_s6 = smov (%p50_p0, %s48_s6), 0  ;;  %p584_p5 = scmp.eq.s32.totalorder %s3815_s2, 1 }
  0x18   : > { %5461 = sst [smem:[#allocation9_spill]] %s5491_s6  ;;  %p4815_p4 = por %p578_p2, %p577_p1 }
  0x19   : > { %s562_s28 = ssub.s32 %s4646_s5, %s5491_s6  ;;  %p3820_p6 = scmp.ge.s32.totalorder %s4650_s1, 1 }
  0x1a   : > { %p565_p7 = scmp.eq.s32.totalorder %s562_s28, 0  ;;  %p4822_p8 = por %p584_p5, %p583_p3 }
  0x1b   : > { %p694_p9 = scmp.lt.s32.totalorder %s4650_s1, 3 }
  0x1c   : > { %s5463_s29 = scalar_select %p4822_p8, 1, 0 }
  0x1d   : > { %s4828_s3 = scalar_select %p565_p7, %s4638_s24, %s567_s27  }
  0x1e   : > { %5464 = sst [smem:[#allocation10_spill]] %s5463_s29  ;;  %p695_p10 = pnand %p3820_p6, %p694_p9 }
  0x1f   : > { %5465 = sst [smem:[#allocation11_spill]] %s4828_s3  ;;  %p776_p11 = scmp.lt.s32.totalorder (!%p695_p10), %s4642_s25, 1 }
  0x20   : > { %698 = sbr.rel (%p695_p10) target bundleno = 3648 (0xe40), region = 112  ;;  %s5466_s4 = sld [smem:[#allocation17_spill]] (!%p695_p10) }
  0x21   : > { %s5468_s27 = sld [smem:[#allocation12_spill]] (!%p695_p10) }
  0x22   : > { %s5469_s0 = sld [smem:[#allocation13_spill]] (!%p695_p10) }
  0x23   : > { %s5470_s24 = sld [smem:[#allocation18_spill]] (!%p695_p10) }
  0x24   : > { %s5475_s8 = sld [smem:[#allocation20_spill]] (!%p695_p10) }
  0x25   : > { %v4652_v1 = vmov 0.0   ;;  %vm4653_vm0 = vmmov 0   ;;  %s777_s26 = scalar_select %p776_p11, %s4642_s25, 1  ;;  %vm870_vm1 = vcmask 261120   ;;  %vm1501_vm2 = vcmask 64512  }
  0x26   : > { %s5467_s23 = smov %s5466_s4  ;;  %v4482_v0 = vld [vmem:[%s5466_s4 + $0x8] sm:$0xff]   ;;  %4069 = vmatprep.subr.bf16.mxu0 %v4652_v1  ;;  %4077 = vmatprep.subr.bf16.mxu1 %v4652_v1  ;;  %s5472_s4 = sld [smem:[#allocation19_spill]]  ;;  %vm1741_vm3 = vcmask 1043456   ;;  %vm3599_vm4 = vcmask 523264  }
  0x27   : > { %v4483_v2 = vld [vmem:[%s5467_s23 + $0x18] sm:$0xff]   ;;  %4070 = vmatpush3.bf16.msra.mxu0 %v4482_v0  ;;  %v4484_v3 = vld [vmem:[%s5467_s23] sm:$0xff]   ;;  %4073 = vmatprep.mubr.msk.bf16.mxu0 %vm4653_vm0, %v4652_v1  ;;  %v4485_v4 = vld [vmem:[%s5467_s23 + $0x10] sm:$0xff]   ;;  %s4852_s6 = sshll.u32 %s777_s26, 3  ;;  %s5476_s9 = sld [smem:[#allocation21_spill]] }
  0x28   : > { %4078 = vmatpush3.bf16.msra.mxu1 %v4483_v2  ;;  %4071 = vmatprep.subr.bf16.mxu0 %v4652_v1  ;;  %s782_s5 = scalar_lea.vmem %s5468_s27, %s4852_s6  ;;  %v4486_v5 = vld [vmem:[%s5467_s23 + $0x28] sm:$0xff]   ;;  %v4487_v7 = vld [vmem:[%s5467_s23 + $0x38] sm:$0xff]   ;;  %v4488_v9 = vld [vmem:[%s5467_s23 + $0x20] sm:$0xff]   ;;  %s786_s26 = scalar_lea.vmem %s5469_s0, %s4852_s6 }
  0x29   : > { %4079 = vmatprep.subr.bf16.mxu1 %v4652_v1  ;;  %4081 = vmatprep.mubr.msk.bf16.mxu1 %vm4653_vm0, %v4652_v1  ;;  %v4862_v6 = vld [vmem:[%s782_s5] sm:$0xff]  ;;  %v4489_v10 = vld [vmem:[%s5467_s23 + $0x30] sm:$0xff]   ;;  %s5471_s29 = smov %s5470_s24  ;;  %v4490_v11 = vld [vmem:[%s5470_s24 + $0x8] sm:$0xff]   ;;  %s5474_s5 = sld [smem:[#allocation15_spill]] }
  0x2a   : > { %v856_v8 = vpack.c.bf16 %v4862_v6, %v4862_v6  ;;  %v4491_v12 = vld [vmem:[%s5471_s29 + $0x18] sm:$0xff]   ;;  %v801_v13 = vld [vmem:[%s786_s26] sm:$0xff]  ;;  %v4493_v15 = vld [vmem:[%s5471_s29 + $0x10] sm:$0xff]   ;;  %s5477_s10 = sld [smem:[#allocation22_spill]] }
  0x2b   : > { %4072 = vmatpush3.bf16.msra.mxu0 %v4484_v3  ;;  %v4492_v14 = vld [vmem:[%s5471_s29] sm:$0xff]   ;;  %v4494_v16 = vld [vmem:[%s5471_s29 + $0x28] sm:$0xff]   ;;  %v4495_v17 = vld [vmem:[%s5471_s29 + $0x38] sm:$0xff]   ;;  %v857_v18 = vpack.c.bf16 %v801_v13, %v801_v13  ;;  %s5478_s1 = sld [smem:[#allocation14_spill]] }
  0x2c   : > { %4080 = vmatpush3.bf16.msra.mxu1 %v4485_v4  ;;  %4085 = vmatprep.subr.bf16.mxu0 %v4652_v1  ;;  %v4496_v19 = vld [vmem:[%s5471_s29 + $0x20] sm:$0xff]   ;;  %v4497_v20 = vld [vmem:[%s5471_s29 + $0x30] sm:$0xff]   ;;  %s5473_s23 = smov %s5472_s4  ;;  %v4498_v21 = vld [vmem:[%s5472_s4 + $0x8] sm:$0xff]   ;;  %s5479_s24 = sld [smem:[#allocation16_spill]] }
  0x2d   : > { %4093 = vmatprep.subr.bf16.mxu1 %v4652_v1  ;;  %v4499_v22 = vld [vmem:[%s5473_s23] sm:$0xff]   ;;  %v4500_v23 = vld [vmem:[%s5473_s23 + $0x18] sm:$0xff]   ;;  %v4501_v24 = vld [vmem:[%s5473_s23 + $0x10] sm:$0xff]   ;;  %s4654_s4 = smov [#allocation2]  }
  0x2e   : > { %4074 = vmatmul.mubr.msk.bf16.vlgmr.msra.gmra.mxu0 %vm870_vm1, %v856_v8  ;;  %v4502_v25 = vld [vmem:[%s5473_s23 + $0x28] sm:$0xff]   ;;  %v4503_v26 = vld [vmem:[%s5473_s23 + $0x20] sm:$0xff]   ;;  %v4504_v27 = vld [vmem:[%s5473_s23 + $0x38] sm:$0xff]  }
  0x2f   : > { %4082 = vmatmul.mubr.msk.bf16.vlgmr.msra.gmra.mxu1 %vm870_vm1, %v856_v8  ;;  %4086 = vmatpush3.bf16.msra.mxu0 %v4486_v5  ;;  %v4505_v28 = vld [vmem:[%s5473_s23 + $0x30] sm:$0xff]  }
  0x30   : > { %4094 = vmatpush3.bf16.msra.mxu1 %v4487_v7  ;;  %4087 = vmatprep.subr.bf16.mxu0 %v4652_v1 }
  0x31   : > { %4095 = vmatprep.subr.bf16.mxu1 %v4652_v1  ;;  %4089 = vmatprep.mubr.msk.bf16.mxu0 %vm4653_vm0, %v4652_v1  ;;  %s790_s0 = scalar_lea.vmem %s5478_s1, %s4852_s6  ;;  %s773_s6 = sand.u32 1, %s4634_s30  }
  0x32   : > { %4097 = vmatprep.mubr.msk.bf16.mxu1 %vm4653_vm0, %v4652_v1  ;;  %s3821_s28 = sshll.u32 %s773_s6, 3 }
  0x33   : > { %4088 = vmatpush3.bf16.msra.mxu0 %v4488_v9  ;;  %s775_s26 = scalar_lea.vmem [#allocation2], %s3821_s28 }
  0x34   : > { %4096 = vmatpush3.bf16.msra.mxu1 %v4489_v10  ;;  %4101 = vmatprep.subr.bf16.mxu0 %v4652_v1  ;;  %s3689_s2 = sshll.u32 %s775_s26, 4  ;;  %s3690_s2 = int_to_ptr.vmem [resolvable:$true] %s3689_s2 }
  0x35   : > { %4109 = vmatprep.subr.bf16.mxu1 %v4652_v1  ;;  %s4574_s27 = scalar_lea.vmem %s3690_s2, 128 }
  0x36   : > { %4090 = vmatmul.mubr.msk.bf16.vlgmr.msra.gmra.mxu0 %vm870_vm1, %v856_v8  ;;  %p4575_p12 = scmp.ne.s32.totalorder %s3690_s2, %s4574_s27 }
  0x37   : > { %4098 = vmatmul.mubr.msk.bf16.vlgmr.msra.gmra.mxu1 %vm870_vm1, %v856_v8  ;;  %4102 = vmatpush3.bf16.msra.mxu0 %v4490_v11 }
  0x38   : > { %4110 = vmatpush3.bf16.msra.mxu1 %v4491_v12  ;;  %4103 = vmatprep.subr.bf16.mxu0 %v4652_v1  ;;  %p4576_p13 = pnand %p4575_p12, %p4815_p4 }
  0x39   : > { %4111 = vmatprep.subr.bf16.mxu1 %v4652_v1  ;;  %4105 = vmatprep.mubr.msk.bf16.mxu0 %vm4653_vm0, %v4652_v1 }
  0x3a   : > { %4113 = vmatprep.mubr.msk.bf16.mxu1 %vm4653_vm0, %v4652_v1  ;;  %p4577_p0 = pneg %p4576_p13 }
  0x3b   : > { %4104 = vmatpush3.bf16.msra.mxu0 %v4492_v14 }
  0x3c   : > { %4112 = vmatpush3.bf16.msra.mxu1 %v4493_v15  ;;  %4117 = vmatprep.subr.bf16.mxu0 %v4652_v1 }
  0x3d   : > { %4125 = vmatprep.subr.bf16.mxu1 %v4652_v1 }
  0x3e   : > { %4106 = vmatmul.mubr.msk.bf16.vlgmr.msra.gmra.mxu0 %vm870_vm1, %v857_v18 }
  0x3f   : > { %4114 = vmatmul.mubr.msk.bf16.vlgmr.msra.gmra.mxu1 %vm870_vm1, %v857_v18  ;;  %4118 = vmatpush3.bf16.msra.mxu0 %v4494_v16 }
  0x40   : > { %4126 = vmatpush3.bf16.msra.mxu1 %v4495_v17  ;;  %4119 = vmatprep.subr.bf16.mxu0 %v4652_v1 }
  0x41   : > { %4127 = vmatprep.subr.bf16.mxu1 %v4652_v1  ;;  %4121 = vmatprep.mubr.msk.bf16.mxu0 %vm4653_vm0, %v4652_v1 }
  0x42   : > { %4129 = vmatprep.mubr.msk.bf16.mxu1 %vm4653_vm0, %v4652_v1 }
  0x43   : > { %4120 = vmatpush3.bf16.msra.mxu0 %v4496_v19 }
  0x44   : > { %4128 = vmatpush3.bf16.msra.mxu1 %v4497_v20  ;;  %4133 = vmatprep.subr.bf16.mxu0 %v4652_v1 }
  0x45   : > { %4141 = vmatprep.subr.bf16.mxu1 %v4652_v1 }
  0x46   : > { %4122 = vmatmul.mubr.msk.bf16.vlgmr.msra.gmra.mxu0 %vm870_vm1, %v857_v18 }
  0x47   : > { %4130 = vmatmul.mubr.msk.bf16.vlgmr.msra.gmra.mxu1 %vm870_vm1, %v857_v18  ;;  %4134 = vmatpush3.bf16.msra.mxu0 %v4498_v21 }
  0x48   : > { %4137 = vmatprep.mubr.msk.bf16.mxu0 %vm4653_vm0, %v4652_v1  ;;  %4135 = vmatprep.subr.bf16.mxu0 %v4652_v1 }
  0x49   : > { %4145 = vmatprep.mubr.msk.bf16.mxu1 %vm4653_vm0, %v4652_v1  ;;  %4142 = vmatpush3.bf16.msra.mxu1 %v4500_v23 }
  0x4a   : > { %4143 = vmatprep.subr.bf16.mxu1 %v4652_v1 }
  0x4b   : > { %4136 = vmatpush3.bf16.msra.mxu0 %v4499_v22 }
  0x4c   : > { %4149 = vmatprep.subr.bf16.mxu0 %v4652_v1 }
  0x4d   : > { %4144 = vmatpush3.bf16.msra.mxu1 %v4501_v24 }
  0x4e   : > { %4138 = vmatmul.mubr.msk.bf16.vlgmr.msra.gmra.mxu0 %vm870_vm1, %v857_v18  ;;  %4157 = vmatprep.subr.bf16.mxu1 %v4652_v1 }
  0x4f   : > { %4150 = vmatpush3.bf16.msra.mxu0 %v4502_v25  ;;  %4153 = vmatprep.mubr.msk.bf16.mxu0 %vm4653_vm0, %v4652_v1 }
  0x50   : > { %4151 = vmatprep.subr.bf16.mxu0 %v4652_v1  ;;  %4146 = vmatmul.mubr.msk.bf16.vlgmr.msra.gmra.mxu1 %vm870_vm1, %v857_v18 }
  0x51   : > { %4158 = vmatpush3.bf16.msra.mxu1 %v4504_v27  ;;  %4161 = vmatprep.mubr.msk.bf16.mxu1 %vm4653_vm0, %v4652_v1 }
  0x52   : > { %4159 = vmatprep.subr.bf16.mxu1 %v4652_v1 }
  0x53   : > { %4152 = vmatpush3.bf16.msra.mxu0 %v4503_v26 }
  0x54   : > { %4165 = vmatprep.subr.bf16.mxu0 %v4652_v1 }
  0x55   : > { %4160 = vmatpush3.bf16.msra.mxu1 %v4505_v28 }
  0x56   : > { %4154 = vmatmul.mubr.msk.bf16.vlgmr.msra.gmra.mxu0 %vm870_vm1, %v857_v18  ;;  %4171 = vmatprep.subr.bf16.mxu1 %v4652_v1 }
  0x57   : > { %4167 = vmatprep.mubr.msk.bf16.mxu0 %vm4653_vm0, %v4652_v1 }
  0x58   : > { %4162 = vmatmul.mubr.msk.bf16.vlgmr.msra.gmra.mxu1 %vm870_vm1, %v857_v18 }
  0x59   : > { %4173 = vmatprep.mubr.msk.bf16.mxu1 %vm4653_vm0, %v4652_v1 }
  0xee   : > { %v908_v29 = vpop.f32.mrf.mxu0 }
  0xef   : > { %v960_v30 = vpop.f32.mrf.mxu1  ;;  %v1489_v55 = vmul.f32 0.35355338, %v908_v29 }
  0xf0   : > { %v4075_v31 = vpop.f32.mrf.mxu0  ;;  %v1490_v56 = vmul.f32 0.35355338, %v960_v30 }
  0xf1   : > { %v4083_v32 = vpop.f32.mrf.mxu1  ;;  %v1493_v61 = vpack.c.bf16 %v1489_v55, %v1489_v55 }
  0xf2   : > { %v911_v33 = vpop.f32.mrf.mxu0  ;;  %v1494_v62 = vpack.c.bf16 %v1490_v56, %v1490_v56 }
  0xf3   : > { %v963_v34 = vpop.f32.mrf.mxu1 }
  0xf4   : > { %v4076_v35 = vpop.f32.mrf.mxu0 }
  0xf5   : > { %v4084_v36 = vpop.f32.mrf.mxu1  ;;  %v855_v35 = vld [vmem:[%s5474_s5] sm:$0xff] }
  0xf6   : > { %v1012_v37 = vpop.f32.mrf.mxu0 }
  0xf7   : > { %v1064_v38 = vpop.f32.mrf.mxu1  ;;  %v1491_v9 = vmul.f32 0.35355338, %v1012_v37 }
  0xf8   : > { %v4091_v39 = vpop.f32.mrf.mxu0  ;;  %v1492_v10 = vmul.f32 0.35355338, %v1064_v38 }
  0xf9   : > { %v4099_v40 = vpop.f32.mrf.mxu1  ;;  %v1495_v13 = vpack.c.bf16 %v1491_v9, %v1491_v9 }
  0xfa   : > { %v1015_v41 = vpop.f32.mrf.mxu0  ;;  %v1496_v14 = vpack.c.bf16 %v1492_v10, %v1492_v10 }
  0xfb   : > { %v1067_v42 = vpop.f32.mrf.mxu1 }
  0xfc   : > { %v4092_v43 = vpop.f32.mrf.mxu0 }
  0xfd   : > { %v4100_v44 = vpop.f32.mrf.mxu1 }
  0xfe   : > { %v1119_v45 = vpop.f32.mrf.mxu0 }
  0xff   : > { %v1171_v46 = vpop.f32.mrf.mxu1  ;;  %v1497_v47 = vpack.c.bf16 %v1119_v45, %v1119_v45 }
 0x100   : > { %v1498_v48 = vpack.c.bf16 %v1171_v46, %v1171_v46  ;;  %v4107_v49 = vpop.f32.mrf.mxu0 }
 0x101   : > { %v4115_v50 = vpop.f32.mrf.mxu1  ;;  %v1506_v51 = vsel %vm1501_vm2, %v1497_v47, 0 }
 0x102   : > { %v1552_v52 = vsel %vm1501_vm2, %v1498_v48, 0  ;;  %v1122_v53 = vpop.f32.mrf.mxu0  ;;  %4166 = vmatpush3.bf16.xpose.msra.mxu0 %v1506_v51 }
 0x103   : > { %v1174_v54 = vpop.f32.mrf.mxu1  ;;  %4172 = vmatpush3.bf16.xpose.msra.mxu1 %v1552_v52  ;;  %4177 = vmatprep.subr.bf16.mxu0 %v4652_v1 }
 0x104   : > { %4183 = vmatprep.subr.bf16.mxu1 %v4652_v1  ;;  %v4108_v57 = vpop.f32.mrf.mxu0 }
 0x105   : > { %v4116_v58 = vpop.f32.mrf.mxu1 }
 0x106   : > { %v1223_v59 = vpop.f32.mrf.mxu0 }
 0x107   : > { %v1275_v60 = vpop.f32.mrf.mxu1  ;;  %v1499_v63 = vpack.c.bf16 %v1223_v59, %v1223_v59 }
 0x108   : > { %v1500_v0 = vpack.c.bf16 %v1275_v60, %v1275_v60  ;;  %v4123_v2 = vpop.f32.mrf.mxu0 }
 0x109   : > { %v4131_v3 = vpop.f32.mrf.mxu1  ;;  %v1598_v4 = vsel %vm1501_vm2, %v1499_v63, 0  ;;  %4168 = vmatmul.mubr.msk.bf16.vlgmr.msra.gmra.mxu0 %vm1501_vm2, %v1493_v61 }
 0x10a   : > { %v1644_v5 = vsel %vm1501_vm2, %v1500_v0, 0  ;;  %4174 = vmatmul.mubr.msk.bf16.vlgmr.msra.gmra.mxu1 %vm1501_vm2, %v1494_v62  ;;  %v1226_v7 = vpop.f32.mrf.mxu0  ;;  %4178 = vmatpush3.bf16.xpose.msra.mxu0 %v1598_v4 }
 0x10b   : > { %v1278_v8 = vpop.f32.mrf.mxu1  ;;  %4184 = vmatpush3.bf16.xpose.msra.mxu1 %v1644_v5  ;;  %4179 = vmatprep.mubr.msk.bf16.mxu0 %vm4653_vm0, %v4652_v1 }
 0x10c   : > { %4185 = vmatprep.mubr.msk.bf16.mxu1 %vm4653_vm0, %v4652_v1  ;;  %v4124_v11 = vpop.f32.mrf.mxu0  ;;  %4189 = vmatprep.subr.bf16.mxu0 %v4652_v1 }
 0x10d   : > { %v4132_v12 = vpop.f32.mrf.mxu1  ;;  %4195 = vmatprep.subr.bf16.mxu1 %v4652_v1 }
 0x10e   : > { %v1327_v15 = vpop.f32.mrf.mxu0 }
 0x10f   : > { %v1734_v16 = vpack.c.bf16 %v1327_v15, %v1327_v15 }
 0x110   : > { %v4139_v17 = vpop.f32.mrf.mxu0  ;;  %v1379_v20 = vpop.f32.mrf.mxu1 }
 0x111   : > { %4180 = vmatmul.mubr.msk.bf16.vlgmr.msra.gmra.mxu0 %vm1501_vm2, %v1495_v13  ;;  %v1743_v18 = vsel %vm1741_vm3, %v1734_v16, 0  ;;  %v1735_v21 = vpack.c.bf16 %v1379_v20, %v1379_v20 }
 0x112   : > { %4186 = vmatmul.mubr.msk.bf16.vlgmr.msra.gmra.mxu1 %vm1501_vm2, %v1496_v14  ;;  %4191 = vmatprep.mubr.msk.bf16.mxu0 %vm4653_vm0, %v4652_v1  ;;  %v1330_v19 = vpop.f32.mrf.mxu0  ;;  %v4147_v23 = vpop.f32.mrf.mxu1 }
 0x113   : > { %4197 = vmatprep.mubr.msk.bf16.mxu1 %vm4653_vm0, %v4652_v1  ;;  %4190 = vmatpush3.bf16.msra.mxu0 %v1743_v18  ;;  %v1789_v24 = vsel %vm1741_vm3, %v1735_v21, 0 }
 0x114   : > { %4201 = vmatprep.subr.bf16.mxu0 %v4652_v1  ;;  %v4140_v22 = vpop.f32.mrf.mxu0  ;;  %v1382_v25 = vpop.f32.mrf.mxu1  ;;  %4196 = vmatpush3.bf16.msra.mxu1 %v1789_v24 }
 0x115   : > { %4207 = vmatprep.subr.bf16.mxu1 %v4652_v1 }
 0x116   : > { %v5007_v26 = vpop.f32.mrf.mxu0  ;;  %v4148_v27 = vpop.f32.mrf.mxu1 }
 0x117   : > { %v1736_v23 = vpack.c.bf16 %v5007_v26, %v5007_v26  ;;  %v851_v26 = vld [vmem:[%s5475_s8] sm:$0xf] }
 0x118   : > { %v4155_v28 = vpop.f32.mrf.mxu0  ;;  %v5010_v30 = vpop.f32.mrf.mxu1 }
 0x119   : > { %v1835_v28 = vsel %vm1741_vm3, %v1736_v23, 0 }
 0x11a   : > { %v1434_v29 = vpop.f32.mrf.mxu0  ;;  %v4163_v32 = vpop.f32.mrf.mxu1 }
 0x11b   : > { %v1737_v29 = vpack.c.bf16 %v5010_v30, %v5010_v30 }
 0x11c   : > { %v4156_v31 = vpop.f32.mrf.mxu0  ;;  %v1486_v33 = vpop.f32.mrf.mxu1 }
 0x11e   : > { %v4164_v34 = vpop.f32.mrf.mxu1 }
 0x11f   : > { %v1881_v34 = vsel %vm1741_vm3, %v1737_v29, 0 }
 0x1c9   : > { %v1542_v36 = vpop.f32.mrf.mxu0 }
 0x1ca   : > { %v1588_v37 = vpop.f32.mrf.mxu1  ;;  %v1543_v38 = vadd.f32 %v1542_v36, %v855_v35  ;;  %v1931_v36 = vsel %vm1741_vm3, %v851_v26, 0 }
 0x1cb   : > { %v4169_v39 = vpop.f32.mrf.mxu0  ;;  %v1589_v41 = vadd.f32 %v1588_v37, %v855_v35 }
 0x1cc   : > { %v4175_v40 = vpop.f32.mrf.mxu1  ;;  %v1686_v42 = vsel %vm1501_vm2, %v1543_v38, -inf }
 0x1cd   : > { %1687 = vmax.xlane.f32.xlu0 %v1686_v42  ;;  %v1545_v44 = vpop.f32.mrf.mxu0  ;;  %v1689_v47 = vsel %vm1501_vm2, %v1589_v41, -inf  ;;  %v852_v40 = vld [vmem:[%s5475_s8 + $0x4] sm:$0xf]  ;;  %v853_v42 = vld [vmem:[%s5475_s8 + $0x8] sm:$0xf] }
 0x1ce   : > { %v1591_v43 = vpop.f32.mrf.mxu1 }
 0x1cf   : > { %v4170_v45 = vpop.f32.mrf.mxu0 }
 0x1d0   : > { %v4176_v46 = vpop.f32.mrf.mxu1  ;;  %v2023_v45 = vsel %vm1741_vm3, %v853_v42, 0 }
 0x1d1   : > { %1690 = vmax.xlane.f32.xlu0 %v1689_v47  ;;  %v1634_v49 = vpop.f32.mrf.mxu0  ;;  %v854_v47 = vld [vmem:[%s5475_s8 + $0xc] sm:$0xf]  ;;  %s5480_s8 = sld [smem:[#allocation23_spill]] }
 0x1d2   : > { %v1680_v48 = vpop.f32.mrf.mxu1  ;;  %v1635_v50 = vadd.f32 %v1634_v49, %v855_v35 }
 0x1d3   : > { %v4181_v51 = vpop.f32.mrf.mxu0  ;;  %v1681_v53 = vadd.f32 %v1680_v48, %v855_v35 }
 0x1d4   : > { %v4187_v52 = vpop.f32.mrf.mxu1  ;;  %v1692_v54 = vsel %vm1501_vm2, %v1635_v50, -inf  ;;  %v2069_v51 = vsel %vm1741_vm3, %v854_v47, 0  ;;  %v4511_v47 = vld [vmem:[%s5476_s9 + $0x38] sm:$0xff]  }
 0x1d5   : > { %1693 = vmax.xlane.f32.xlu1 %v1692_v54  ;;  %v1637_v56 = vpop.f32.mrf.mxu0  ;;  %v1695_v59 = vsel %vm1501_vm2, %v1681_v53, -inf }
 0x1d6   : > { %v1683_v55 = vpop.f32.mrf.mxu1 }
 0x1d7   : > { %v4182_v57 = vpop.f32.mrf.mxu0 }
 0x1d8   : > { %v4188_v58 = vpop.f32.mrf.mxu1 }
 0x1d9   : > { %1696 = vmax.xlane.f32.xlu1 %v1695_v59 }
 0x256   : > { %v1688_v60 = vpop.xlane.xlu0 %1687 }
 0x257   : > { %v1698_v61 = vsub.f32 %v1543_v38, %v1688_v60 }
 0x259   : > { %v1702_v62 = vmul.f32 1.442695, %v1698_v61 }
 0x25a   : > { %v1691_v63 = vpop.xlane.xlu0 %1690 }
 0x25b   : > { %4536 = vpow2.f32 %v1702_v62  ;;  %v1699_v0 = vsub.f32 %v1589_v41, %v1691_v63  ;;  %v1977_v41 = vsel %vm1741_vm3, %v852_v40, 0 }
 0x25d   : > { %v1704_v2 = vmul.f32 1.442695, %v1699_v0 }
 0x25e   : > { %v1694_v3 = vpop.xlane.xlu1 %1693 }
 0x25f   : > { %4538 = vpow2.f32 %v1704_v2  ;;  %v1700_v4 = vsub.f32 %v1635_v50, %v1694_v3 }
 0x261   : > { %v1706_v5 = vmul.f32 1.442695, %v1700_v4 }
 0x262   : > { %v1697_v7 = vpop.xlane.xlu1 %1696 }
 0x263   : > { %4540 = vpow2.f32 %v1706_v5  ;;  %v1701_v8 = vsub.f32 %v1681_v53, %v1697_v7 }
 0x265   : > { %v1708_v9 = vmul.f32 1.442695, %v1701_v8 }
 0x267   : > { %4542 = vpow2.f32 %v1708_v9 }
 0x268   : > { %v4537_v10 = vpop.eup %4536 }
 0x269   : > { %v1710_v11 = vsel %vm1501_vm2, %v4537_v10, 0.0 }
 0x26a   : > { %1711 = vadd.xlane.f32.xlu0 %v1710_v11 }
 0x26c   : > { %v4539_v12 = vpop.eup %4538 }
 0x26d   : > { %v1713_v13 = vsel %vm1501_vm2, %v4539_v12, 0.0 }
 0x26e   : > { %1714 = vadd.xlane.f32.xlu1 %v1713_v13 }
 0x270   : > { %v4541_v14 = vpop.eup %4540 }
 0x271   : > { %v1716_v15 = vsel %vm1501_vm2, %v4541_v14, 0.0 }
 0x272   : > { %1717 = vadd.xlane.f32.xlu0 %v1716_v15 }
 0x274   : > { %v4543_v16 = vpop.eup %4542 }
 0x275   : > { %v1719_v17 = vsel %vm1501_vm2, %v4543_v16, 0.0 }
 0x276   : > { %1720 = vadd.xlane.f32.xlu1 %v1719_v17 }
 0x2f3   : > { %v1712_v18 = vpop.xlane.xlu0 %1711 }
 0x2f4   : > { %4544 = vrcp.f32 %v1712_v18 }
 0x2f7   : > { %v1715_v19 = vpop.xlane.xlu1 %1714 }
 0x2f8   : > { %4546 = vrcp.f32 %v1715_v19 }
 0x2fb   : > { %v1718_v20 = vpop.xlane.xlu0 %1717 }
 0x2fc   : > { %4548 = vrcp.f32 %v1718_v20 }
 0x2ff   : > { %v1721_v21 = vpop.xlane.xlu1 %1720 }
 0x300   : > { %4550 = vrcp.f32 %v1721_v21 }
 0x301   : > { %v4545_v22 = vpop.eup %4544 }
 0x302   : > { %v1726_v24 = vmul.f32 %v4545_v22, %v4537_v10 }
 0x304   : > { %v1730_v25 = vpack.c.bf16 %v1726_v24, %v1726_v24 }
 0x305   : > { %v4547_v27 = vpop.eup %4546 }
 0x306   : > { %4192 = vmatmul.mubr.msk.bf16.vlgmr.msra.gmra.mxu0 %vm1501_vm2, %v1730_v25  ;;  %v1727_v31 = vmul.f32 %v4547_v27, %v4539_v12 }
 0x307   : > { %4202 = vmatpush3.bf16.msra.mxu0 %v1835_v28  ;;  %4203 = vmatprep.mubr.msk.bf16.mxu0 %vm4653_vm0, %v4652_v1 }
 0x308   : > { %v1731_v32 = vpack.c.bf16 %v1727_v31, %v1727_v31  ;;  %4213 = vmatprep.subr.bf16.mxu0 %v4652_v1 }
 0x309   : > { %v4549_v33 = vpop.eup %4548 }
 0x30a   : > { %4198 = vmatmul.mubr.msk.bf16.vlgmr.msra.gmra.mxu1 %vm1501_vm2, %v1731_v32  ;;  %v1728_v30 = vmul.f32 %v4549_v33, %v4541_v14 }
 0x30b   : > { %4208 = vmatpush3.bf16.msra.mxu1 %v1881_v34  ;;  %4209 = vmatprep.mubr.msk.bf16.mxu1 %vm4653_vm0, %v4652_v1 }
 0x30c   : > { %v1732_v35 = vpack.c.bf16 %v1728_v30, %v1728_v30  ;;  %4219 = vmatprep.subr.bf16.mxu1 %v4652_v1  ;;  %v4506_v30 = vld [vmem:[%s5476_s9 + $0x8] sm:$0xff]  }
 0x30d   : > { %v4551_v37 = vpop.eup %4550 }
 0x30e   : > { %4204 = vmatmul.mubr.msk.bf16.vlgmr.msra.gmra.mxu0 %vm1501_vm2, %v1732_v35  ;;  %v1729_v38 = vmul.f32 %v4551_v37, %v4543_v16  ;;  %v4507_v35 = vld [vmem:[%s5476_s9 + $0x18] sm:$0xff]  }
 0x30f   : > { %4214 = vmatpush3.bf16.msra.mxu0 %v1931_v36  ;;  %4215 = vmatprep.mubr.msk.bf16.mxu0 %vm4653_vm0, %v4652_v1  ;;  %v4509_v36 = vld [vmem:[%s5476_s9 + $0x10] sm:$0xff]  }
 0x310   : > { %v1733_v39 = vpack.c.bf16 %v1729_v38, %v1729_v38  ;;  %4225 = vmatprep.subr.bf16.mxu0 %v4652_v1 }
 0x312   : > { %4210 = vmatmul.mubr.msk.bf16.vlgmr.msra.gmra.mxu1 %vm1501_vm2, %v1733_v39 }
 0x313   : > { %4221 = vmatprep.mubr.msk.bf16.mxu1 %vm4653_vm0, %v4652_v1  ;;  %4220 = vmatpush3.bf16.msra.mxu1 %v1977_v41  ;;  %v3873_v41 = vld [vmem:[%s5426_s17] ss:$0 sm:$0xff] }
 0x314   : > { %4231 = vmatprep.subr.bf16.mxu1 %v4652_v1 }
 0x3c6   : > { %v1779_v43 = vpop.f32.mrf.mxu0 }
 0x3c7   : > { %v1923_v44 = vpack.c.bf16 %v1779_v43, %v1779_v43  ;;  %v3874_v43 = vld [vmem:[%s5427_s18] ss:$0 sm:$0xff] }
 0x3c8   : > { %v4193_v46 = vpop.f32.mrf.mxu0 }
 0x3c9   : > { %4216 = vmatmul.mubr.msk.bf16.vlgmr.msra.gmra.mxu0 %vm1501_vm2, %v1923_v44  ;;  %v4510_v46 = vld [vmem:[%s5476_s9 + $0x28] sm:$0xff]  }
 0x3ca   : > { %v1782_v48 = vpop.f32.mrf.mxu0  ;;  %v1825_v49 = vpop.f32.mrf.mxu1  ;;  %4226 = vmatpush3.bf16.msra.mxu0 %v2023_v45  ;;  %4227 = vmatprep.mubr.msk.bf16.mxu0 %vm4653_vm0, %v4652_v1 }
 0x3cb   : > { %v1924_v50 = vpack.c.bf16 %v1825_v49, %v1825_v49  ;;  %4237 = vmatprep.subr.bf16.mxu0 %v4652_v1  ;;  %v4512_v49 = vld [vmem:[%s5476_s9 + $0x20] sm:$0xff]  }
 0x3cc   : > { %v4194_v52 = vpop.f32.mrf.mxu0  ;;  %v4199_v53 = vpop.f32.mrf.mxu1 }
 0x3cd   : > { %4222 = vmatmul.mubr.msk.bf16.vlgmr.msra.gmra.mxu1 %vm1501_vm2, %v1924_v50  ;;  %v4513_v50 = vld [vmem:[%s5476_s9 + $0x30] sm:$0xff]   ;;  %v4515_v52 = vld [vmem:[%s5477_s10 + $0x18] sm:$0xff]   ;;  %v802_v53 = vld [vmem:[%s790_s0] sm:$0xff]  ;;  %s3938_s0 = sshll.u32 %s4642_s25, 7 }
 0x3ce   : > { %v1828_v54 = vpop.f32.mrf.mxu1  ;;  %v1871_v55 = vpop.f32.mrf.mxu0  ;;  %4232 = vmatpush3.bf16.msra.mxu1 %v2069_v51  ;;  %4233 = vmatprep.mubr.msk.bf16.mxu1 %vm4653_vm0, %v4652_v1  ;;  %v4514_v51 = vld [vmem:[%s5477_s10 + $0x8] sm:$0xff]  }
 0x3cf   : > { %v1925_v56 = vpack.c.bf16 %v1871_v55, %v1871_v55  ;;  %4245 = vmatprep.subr.bf16.mxu1 %v4652_v1  ;;  %v4516_v54 = vld [vmem:[%s5477_s10] sm:$0xff]   ;;  %v4517_v55 = vld [vmem:[%s5477_s10 + $0x10] sm:$0xff]  }
 0x3d0   : > { %v4200_v57 = vpop.f32.mrf.mxu1  ;;  %v4205_v58 = vpop.f32.mrf.mxu0 }
 0x3d1   : > { %4228 = vmatmul.mubr.msk.bf16.vlgmr.msra.gmra.mxu0 %vm1501_vm2, %v1925_v56  ;;  %v2203_v56 = vpack.c.bf16 %v802_v53, %v802_v53  ;;  %v4518_v57 = vld [vmem:[%s5477_s10 + $0x28] sm:$0xff]   ;;  %v4519_v58 = vld [vmem:[%s5477_s10 + $0x38] sm:$0xff]  }
 0x3d2   : > { %v1874_v59 = vpop.f32.mrf.mxu0  ;;  %v1917_v60 = vpop.f32.mrf.mxu1  ;;  %4241 = vmatprep.mubr.msk.bf16.mxu0 %vm4653_vm0, %v4652_v1  ;;  %4238 = vmatpush3.bf16.msra.mxu0 %v4506_v30 }
 0x3d3   : > { %v1926_v61 = vpack.c.bf16 %v1917_v60, %v1917_v60  ;;  %4239 = vmatprep.subr.bf16.mxu0 %v4652_v1  ;;  %v4520_v59 = vld [vmem:[%s5477_s10 + $0x20] sm:$0xff]   ;;  %v4521_v60 = vld [vmem:[%s5477_s10 + $0x30] sm:$0xff]   ;;  %s3675_s10 = scalar_lea.sflag [#allocation3], %s773_s6 }
 0x3d4   : > { %v4206_v62 = vpop.f32.mrf.mxu0  ;;  %v4211_v63 = vpop.f32.mrf.mxu1 }
 0x3d5   : > { %4234 = vmatmul.mubr.msk.bf16.vlgmr.msra.gmra.mxu1 %vm1501_vm2, %v1926_v61  ;;  %v4522_v61 = vld [vmem:[%s5420_s11 + $0x8] sm:$0xff]   ;;  %v4523_v62 = vld [vmem:[%s5420_s11 + $0x18] sm:$0xff]   ;;  %v4524_v63 = vld [vmem:[%s5420_s11] sm:$0xff]  }
 0x3d6   : > { %v1920_v0 = vpop.f32.mrf.mxu1  ;;  %4249 = vmatprep.mubr.msk.bf16.mxu1 %vm4653_vm0, %v4652_v1  ;;  %4246 = vmatpush3.bf16.msra.mxu1 %v4507_v35 }
 0x3d7   : > { %4247 = vmatprep.subr.bf16.mxu1 %v4652_v1  ;;  %v4525_v0 = vld [vmem:[%s5420_s11 + $0x10] sm:$0xff]  }
 0x3d8   : > { %v4212_v2 = vpop.f32.mrf.mxu1 }
 0x3d9   : > { %v4526_v2 = vld [vmem:[%s5420_s11 + $0x28] sm:$0xff]  }
 0x3da   : > { %4248 = vmatpush3.bf16.msra.mxu1 %v4509_v36 }
 0x3db   : > { %4261 = vmatprep.subr.bf16.mxu1 %v4652_v1 }
 0x489   : > { %v1967_v3 = vpop.f32.mrf.mxu0 }
 0x48a   : > { %v2111_v13 = vsel %vm870_vm1, %v1967_v3, 0.0  ;;  %v4527_v3 = vld [vmem:[%s5420_s11 + $0x38] sm:$0xff]  }
 0x48b   : > { %v4217_v4 = vpop.f32.mrf.mxu0 }
 0x48c   : > { %v4528_v4 = vld [vmem:[%s5420_s11 + $0x20] sm:$0xff]  }
 0x48d   : > { %v1970_v5 = vpop.f32.mrf.mxu0  ;;  %v2013_v7 = vpop.f32.mrf.mxu1 }
 0x48e   : > { %v2112_v10 = vsel %vm870_vm1, %v2013_v7, 0.0  ;;  %v4529_v5 = vld [vmem:[%s5420_s11 + $0x30] sm:$0xff]  }
 0x48f   : > { %v4218_v8 = vpop.f32.mrf.mxu0  ;;  %v4223_v9 = vpop.f32.mrf.mxu1  ;;  %v2113_v15 = vadd.f32 %v2112_v10, %v2111_v13 }
 0x491   : > { %v2016_v11 = vpop.f32.mrf.mxu1  ;;  %v2059_v12 = vpop.f32.mrf.mxu0 }
 0x492   : > { %v2114_v14 = vsel %vm870_vm1, %v2059_v12, 0.0 }
 0x493   : > { %v4224_v16 = vpop.f32.mrf.mxu1  ;;  %v4229_v17 = vpop.f32.mrf.mxu0  ;;  %v2115_v18 = vadd.f32 %v2114_v14, %v2113_v15 }
 0x495   : > { %v2062_v19 = vpop.f32.mrf.mxu0  ;;  %v2105_v20 = vpop.f32.mrf.mxu1 }
 0x496   : > { %v2116_v21 = vsel %vm870_vm1, %v2105_v20, 0.0 }
 0x497   : > { %v2117_v22 = vadd.f32 %v2116_v21, %v2115_v18  ;;  %v4230_v23 = vpop.f32.mrf.mxu0  ;;  %v4235_v24 = vpop.f32.mrf.mxu1 }
 0x499   : > { %v2108_v25 = vpop.f32.mrf.mxu1  ;;  %v2118_v27 = vadd.f32 %v2117_v22, %v4862_v6  ;;  %v4508_v6 = vld [vmem:[%s5476_s9] sm:$0xff]   ;;  %s3687_s9 = scalar_lea.hbm %s5480_s8, %s3938_s0 }
 0x49a   : > { %4240 = vmatpush3.bf16.msra.mxu0 %v4508_v6 }
 0x49b   : > { %v4236_v28 = vpop.f32.mrf.mxu1  ;;  %v2121_v29 = vsel %vm870_vm1, %v2118_v27, 0.0  ;;  %4253 = vmatprep.subr.bf16.mxu0 %v4652_v1 }
 0x49c   : > { %2122 = vadd.xlane.f32.xlu0 %v2121_v29 }
 0x525   : > { %v2123_v31 = vpop.xlane.xlu0 %2122 }
 0x526   : > { %v2125_v32 = vmul.f32 0.03125, %v2123_v31 }
 0x528   : > { %v2126_v33 = vsub.f32 %v2118_v27, %v2125_v32 }
 0x52a   : > { %v2127_v26 = vmul.f32 %v2126_v33, %v2126_v33 }
 0x52c   : > { %v2128_v34 = vsel %vm870_vm1, %v2127_v26, 0.0 }
 0x52d   : > { %2129 = vadd.xlane.f32.xlu1 %v2128_v34 }
 0x5b6   : > { %v2130_v37 = vpop.xlane.xlu1 %2129 }
 0x5b7   : > { %v2131_v38 = vmul.f32 0.03125, %v2130_v37 }
 0x5b9   : > { %v2132_v39 = vadd.f32 1e-05, %v2131_v38 }
 0x5bb   : > { %4552 = vrsqrt.f32 %v2132_v39 }
 0x5c8   : > { %v4553_v40 = vpop.eup %4552 }
 0x5c9   : > { %v2134_v42 = vmul.f32 %v4553_v40, %v2126_v33 }
 0x5cb   : > { %v2141_v44 = vmul.f32 %v3873_v41, %v2134_v42 }
 0x5cd   : > { %v5104_v45 = vadd.f32 %v3874_v43, %v2141_v44 }
 0x5cf   : > { %v2202_v48 = vpack.c.bf16 %v5104_v45, %v5104_v45 }
 0x5d1   : > { %4242 = vmatmul.mubr.msk.bf16.vlgmr.msra.gmra.mxu0 %vm870_vm1, %v2202_v48  ;;  %4250 = vmatmul.mubr.msk.bf16.vlgmr.msra.gmra.mxu1 %vm870_vm1, %v2202_v48 }
 0x5d2   : > { %4254 = vmatpush3.bf16.msra.mxu0 %v4510_v46  ;;  %4262 = vmatpush3.bf16.msra.mxu1 %v4511_v47 }
 0x5d3   : > { %4255 = vmatprep.subr.bf16.mxu0 %v4652_v1  ;;  %4263 = vmatprep.subr.bf16.mxu1 %v4652_v1 }
 0x5d4   : > { %4257 = vmatprep.mubr.msk.bf16.mxu0 %vm4653_vm0, %v4652_v1  ;;  %4265 = vmatprep.mubr.msk.bf16.mxu1 %vm4653_vm0, %v4652_v1 }
 0x5d6   : > { %4256 = vmatpush3.bf16.msra.mxu0 %v4512_v49  ;;  %4264 = vmatpush3.bf16.msra.mxu1 %v4513_v50 }
 0x5d7   : > { %4269 = vmatprep.subr.bf16.mxu0 %v4652_v1  ;;  %4277 = vmatprep.subr.bf16.mxu1 %v4652_v1 }
 0x5d9   : > { %4258 = vmatmul.mubr.msk.bf16.vlgmr.msra.gmra.mxu0 %vm870_vm1, %v2202_v48  ;;  %4266 = vmatmul.mubr.msk.bf16.vlgmr.msra.gmra.mxu1 %vm870_vm1, %v2202_v48 }
 0x5da   : > { %4270 = vmatpush3.bf16.msra.mxu0 %v4514_v51  ;;  %4278 = vmatpush3.bf16.msra.mxu1 %v4515_v52 }
 0x5db   : > { %4271 = vmatprep.subr.bf16.mxu0 %v4652_v1  ;;  %4279 = vmatprep.subr.bf16.mxu1 %v4652_v1 }
 0x5dc   : > { %4273 = vmatprep.mubr.msk.bf16.mxu0 %vm4653_vm0, %v4652_v1  ;;  %4281 = vmatprep.mubr.msk.bf16.mxu1 %vm4653_vm0, %v4652_v1 }
 0x5de   : > { %4272 = vmatpush3.bf16.msra.mxu0 %v4516_v54  ;;  %4280 = vmatpush3.bf16.msra.mxu1 %v4517_v55 }
 0x5df   : > { %4285 = vmatprep.subr.bf16.mxu0 %v4652_v1  ;;  %4293 = vmatprep.subr.bf16.mxu1 %v4652_v1 }
 0x5e1   : > { %4274 = vmatmul.mubr.msk.bf16.vlgmr.msra.gmra.mxu0 %vm870_vm1, %v2203_v56  ;;  %4282 = vmatmul.mubr.msk.bf16.vlgmr.msra.gmra.mxu1 %vm870_vm1, %v2203_v56 }
 0x5e2   : > { %4286 = vmatpush3.bf16.msra.mxu0 %v4518_v57  ;;  %4294 = vmatpush3.bf16.msra.mxu1 %v4519_v58 }
 0x5e3   : > { %4287 = vmatprep.subr.bf16.mxu0 %v4652_v1  ;;  %4295 = vmatprep.subr.bf16.mxu1 %v4652_v1 }
 0x5e4   : > { %4289 = vmatprep.mubr.msk.bf16.mxu0 %vm4653_vm0, %v4652_v1  ;;  %4297 = vmatprep.mubr.msk.bf16.mxu1 %vm4653_vm0, %v4652_v1 }
 0x5e6   : > { %4288 = vmatpush3.bf16.msra.mxu0 %v4520_v59  ;;  %4296 = vmatpush3.bf16.msra.mxu1 %v4521_v60 }
 0x5e7   : > { %4301 = vmatprep.subr.bf16.mxu0 %v4652_v1  ;;  %4309 = vmatprep.subr.bf16.mxu1 %v4652_v1 }
 0x5e9   : > { %4290 = vmatmul.mubr.msk.bf16.vlgmr.msra.gmra.mxu0 %vm870_vm1, %v2203_v56  ;;  %4298 = vmatmul.mubr.msk.bf16.vlgmr.msra.gmra.mxu1 %vm870_vm1, %v2203_v56 }
 0x5ea   : > { %4302 = vmatpush3.bf16.msra.mxu0 %v4522_v61  ;;  %4305 = vmatprep.mubr.msk.bf16.mxu0 %vm4653_vm0, %v4652_v1 }
 0x5eb   : > { %4303 = vmatprep.subr.bf16.mxu0 %v4652_v1  ;;  %4313 = vmatprep.mubr.msk.bf16.mxu1 %vm4653_vm0, %v4652_v1 }
 0x5ec   : > { %4310 = vmatpush3.bf16.msra.mxu1 %v4523_v62 }
 0x5ed   : > { %4311 = vmatprep.subr.bf16.mxu1 %v4652_v1 }
 0x5ee   : > { %4304 = vmatpush3.bf16.msra.mxu0 %v4524_v63 }
 0x5ef   : > { %4317 = vmatprep.subr.bf16.mxu0 %v4652_v1 }
 0x5f0   : > { %4312 = vmatpush3.bf16.msra.mxu1 %v4525_v0 }
 0x5f1   : > { %4306 = vmatmul.mubr.msk.bf16.vlgmr.msra.gmra.mxu0 %vm870_vm1, %v2203_v56  ;;  %4325 = vmatprep.subr.bf16.mxu1 %v4652_v1 }
 0x5f2   : > { %4318 = vmatpush3.bf16.msra.mxu0 %v4526_v2  ;;  %4321 = vmatprep.mubr.msk.bf16.mxu0 %vm4653_vm0, %v4652_v1 }
 0x5f3   : > { %4314 = vmatmul.mubr.msk.bf16.vlgmr.msra.gmra.mxu1 %vm870_vm1, %v2203_v56  ;;  %4319 = vmatprep.subr.bf16.mxu0 %v4652_v1 }
 0x5f4   : > { %4326 = vmatpush3.bf16.msra.mxu1 %v4527_v3  ;;  %4329 = vmatprep.mubr.msk.bf16.mxu1 %vm4653_vm0, %v4652_v1 }
 0x5f5   : > { %4327 = vmatprep.subr.bf16.mxu1 %v4652_v1 }
 0x5f6   : > { %4320 = vmatpush3.bf16.msra.mxu0 %v4528_v4 }
 0x5f7   : > { %4333 = vmatprep.subr.bf16.mxu0 %v4652_v1 }
 0x5f8   : > { %4328 = vmatpush3.bf16.msra.mxu1 %v4529_v5 }
 0x5f9   : > { %4322 = vmatmul.mubr.msk.bf16.vlgmr.msra.gmra.mxu0 %vm870_vm1, %v2203_v56  ;;  %4339 = vmatprep.subr.bf16.mxu1 %v4652_v1 }
 0x5fa   : > { %4335 = vmatprep.mubr.msk.bf16.mxu0 %vm4653_vm0, %v4652_v1 }
 0x5fb   : > { %4330 = vmatmul.mubr.msk.bf16.vlgmr.msra.gmra.mxu1 %vm870_vm1, %v2203_v56 }
 0x5fc   : > { %4341 = vmatprep.mubr.msk.bf16.mxu1 %vm4653_vm0, %v4652_v1 }
 0x691   : > { %v2253_v7 = vpop.f32.mrf.mxu0  ;;  %v2305_v8 = vpop.f32.mrf.mxu1 }
 0x692   : > { %v2834_v34 = vmul.f32 0.35355338, %v2253_v7  ;;  %v2835_v30 = vmul.f32 0.35355338, %v2305_v8 }
 0x693   : > { %v4243_v9 = vpop.f32.mrf.mxu0  ;;  %v4251_v10 = vpop.f32.mrf.mxu1 }
 0x694   : > { %v2838_v38 = vpack.c.bf16 %v2834_v34, %v2834_v34  ;;  %v2839_v39 = vpack.c.bf16 %v2835_v30, %v2835_v30 }
 0x695   : > { %v2256_v11 = vpop.f32.mrf.mxu0  ;;  %v2308_v12 = vpop.f32.mrf.mxu1 }
 0x697   : > { %v4244_v13 = vpop.f32.mrf.mxu0  ;;  %v4252_v14 = vpop.f32.mrf.mxu1 }
 0x698   : > { %v2201_v13 = vld [vmem:[%s5479_s24] sm:$0xff]  ;;  %s4578_s24 = sshll.u32 %s4654_s4, 4  ;;  %s4579_s24 = int_to_ptr.vmem [resolvable:$false] %s4578_s24 }
 0x699   : > { %v2357_v15 = vpop.f32.mrf.mxu0  ;;  %v2409_v16 = vpop.f32.mrf.mxu1  ;;  %s4580_s25 = scalar_lea.vmem %s4579_s24, 256  ;;  %p4581_p1 = scmp.lt.s32.totalorder %s3690_s2, %s4579_s24 }
 0x69a   : > { %v2836_v49 = vmul.f32 0.35355338, %v2357_v15  ;;  %v2837_v50 = vmul.f32 0.35355338, %v2409_v16  ;;  %p4582_p2 = scmp.lt.s32.totalorder %s4580_s25, %s4574_s27 }
 0x69b   : > { %v4259_v17 = vpop.f32.mrf.mxu0  ;;  %v4267_v18 = vpop.f32.mrf.mxu1 }
 0x69c   : > { %v2840_v53 = vpack.c.bf16 %v2836_v49, %v2836_v49  ;;  %v2841_v54 = vpack.c.bf16 %v2837_v50, %v2837_v50  ;;  %p4583_p3 = por %p4582_p2, %p4581_p1 }
 0x69d   : > { %v2360_v19 = vpop.f32.mrf.mxu0  ;;  %v2412_v20 = vpop.f32.mrf.mxu1 }
 0x69e   : > { %p4584_p5 = pnand %p4583_p3, %p4577_p0 }
 0x69f   : > { %v4260_v21 = vpop.f32.mrf.mxu0  ;;  %v4268_v22 = vpop.f32.mrf.mxu1 }
 0x6a1   : > { %v2464_v23 = vpop.f32.mrf.mxu0  ;;  %v2516_v24 = vpop.f32.mrf.mxu1 }
 0x6a2   : > { %v2842_v25 = vpack.c.bf16 %v2464_v23, %v2464_v23  ;;  %v2843_v27 = vpack.c.bf16 %v2516_v24, %v2516_v24 }
 0x6a3   : > { %v4275_v28 = vpop.f32.mrf.mxu0  ;;  %v4283_v29 = vpop.f32.mrf.mxu1 }
 0x6a4   : > { %v2850_v31 = vsel %vm1501_vm2, %v2842_v25, 0  ;;  %v2896_v32 = vsel %vm1501_vm2, %v2843_v27, 0 }
 0x6a5   : > { %v2467_v33 = vpop.f32.mrf.mxu0  ;;  %v2519_v26 = vpop.f32.mrf.mxu1  ;;  %4334 = vmatpush3.bf16.xpose.msra.mxu0 %v2850_v31  ;;  %4340 = vmatpush3.bf16.xpose.msra.mxu1 %v2896_v32 }
 0x6a6   : > { %4345 = vmatprep.subr.bf16.mxu0 %v4652_v1  ;;  %4351 = vmatprep.subr.bf16.mxu1 %v4652_v1 }
 0x6a7   : > { %v4276_v35 = vpop.f32.mrf.mxu0  ;;  %v4284_v6 = vpop.f32.mrf.mxu1 }
 0x6a9   : > { %v2568_v36 = vpop.f32.mrf.mxu0  ;;  %v2620_v37 = vpop.f32.mrf.mxu1 }
 0x6aa   : > { %v2844_v40 = vpack.c.bf16 %v2568_v36, %v2568_v36  ;;  %v2845_v41 = vpack.c.bf16 %v2620_v37, %v2620_v37 }
 0x6ab   : > { %v4291_v42 = vpop.f32.mrf.mxu0  ;;  %v4299_v43 = vpop.f32.mrf.mxu1 }
 0x6ac   : > { %v2942_v44 = vsel %vm1501_vm2, %v2844_v40, 0  ;;  %v2988_v46 = vsel %vm1501_vm2, %v2845_v41, 0  ;;  %4336 = vmatmul.mubr.msk.bf16.vlgmr.msra.gmra.mxu0 %vm1501_vm2, %v2838_v38  ;;  %4342 = vmatmul.mubr.msk.bf16.vlgmr.msra.gmra.mxu1 %vm1501_vm2, %v2839_v39 }
 0x6ad   : > { %v2571_v47 = vpop.f32.mrf.mxu0  ;;  %v2623_v48 = vpop.f32.mrf.mxu1  ;;  %4346 = vmatpush3.bf16.xpose.msra.mxu0 %v2942_v44  ;;  %4352 = vmatpush3.bf16.xpose.msra.mxu1 %v2988_v46 }
 0x6ae   : > { %4347 = vmatprep.mubr.msk.bf16.mxu0 %vm4653_vm0, %v4652_v1  ;;  %4353 = vmatprep.mubr.msk.bf16.mxu1 %vm4653_vm0, %v4652_v1 }
 0x6af   : > { %v4292_v51 = vpop.f32.mrf.mxu0  ;;  %v4300_v52 = vpop.f32.mrf.mxu1  ;;  %4357 = vmatprep.subr.bf16.mxu0 %v4652_v1  ;;  %4363 = vmatprep.subr.bf16.mxu1 %v4652_v1 }
 0x6b1   : > { %v2672_v55 = vpop.f32.mrf.mxu0 }
 0x6b2   : > { %v3078_v56 = vpack.c.bf16 %v2672_v55, %v2672_v55 }
 0x6b3   : > { %v4307_v57 = vpop.f32.mrf.mxu0  ;;  %v2724_v58 = vpop.f32.mrf.mxu1 }
 0x6b4   : > { %4348 = vmatmul.mubr.msk.bf16.vlgmr.msra.gmra.mxu0 %vm1501_vm2, %v2840_v53  ;;  %4354 = vmatmul.mubr.msk.bf16.vlgmr.msra.gmra.mxu1 %vm1501_vm2, %v2841_v54  ;;  %v3086_v59 = vsel %vm1741_vm3, %v3078_v56, 0  ;;  %v3079_v60 = vpack.c.bf16 %v2724_v58, %v2724_v58 }
 0x6b5   : > { %4359 = vmatprep.mubr.msk.bf16.mxu0 %vm4653_vm0, %v4652_v1  ;;  %4365 = vmatprep.mubr.msk.bf16.mxu1 %vm4653_vm0, %v4652_v1  ;;  %v2675_v61 = vpop.f32.mrf.mxu0  ;;  %v4315_v62 = vpop.f32.mrf.mxu1 }
 0x6b6   : > { %4358 = vmatpush3.bf16.msra.mxu0 %v3086_v59  ;;  %v3132_v63 = vsel %vm1741_vm3, %v3079_v60, 0 }
 0x6b7   : > { %4369 = vmatprep.subr.bf16.mxu0 %v4652_v1  ;;  %v4308_v0 = vpop.f32.mrf.mxu0  ;;  %v2727_v2 = vpop.f32.mrf.mxu1  ;;  %4364 = vmatpush3.bf16.msra.mxu1 %v3132_v63 }
 0x6b8   : > { %4375 = vmatprep.subr.bf16.mxu1 %v4652_v1 }
 0x6b9   : > { %v4316_v3 = vpop.f32.mrf.mxu1  ;;  %v5252_v4 = vpop.f32.mrf.mxu0 }
 0x6ba   : > { %v3080_v3 = vpack.c.bf16 %v5252_v4, %v5252_v4  ;;  %v2198_v4 = vld [vmem:[%s5421_s12 + $0x4] sm:$0xf] }
 0x6bb   : > { %v4323_v5 = vpop.f32.mrf.mxu0  ;;  %v5254_v7 = vpop.f32.mrf.mxu1 }
 0x6bc   : > { %v3081_v0 = vpack.c.bf16 %v5254_v7, %v5254_v7 }
 0x6bd   : > { %v2779_v8 = vpop.f32.mrf.mxu0  ;;  %v4331_v9 = vpop.f32.mrf.mxu1 }
 0x6bf   : > { %v4324_v10 = vpop.f32.mrf.mxu0  ;;  %v2831_v11 = vpop.f32.mrf.mxu1 }
 0x6c0   : > { %v3224_v10 = vsel %vm1741_vm3, %v3081_v0, 0  ;;  %v3178_v11 = vsel %vm1741_vm3, %v3080_v3, 0 }
 0x6c1   : > { %v4332_v12 = vpop.f32.mrf.mxu1 }
 0x76c   : > { %v2886_v14 = vpop.f32.mrf.mxu0  ;;  %v2932_v15 = vpop.f32.mrf.mxu1 }
 0x76d   : > { %v2887_v16 = vadd.f32 %v2886_v14, %v2201_v13  ;;  %v2933_v17 = vadd.f32 %v2932_v15, %v2201_v13  ;;  %v2197_v14 = vld [vmem:[%s5421_s12] sm:$0xf] }
 0x76e   : > { %v4337_v18 = vpop.f32.mrf.mxu0  ;;  %v4343_v19 = vpop.f32.mrf.mxu1 }
 0x76f   : > { %v3033_v20 = vsel %vm1501_vm2, %v2933_v17, -inf  ;;  %v3030_v21 = vsel %vm1501_vm2, %v2887_v16, -inf  ;;  %v3274_v19 = vsel %vm1741_vm3, %v2197_v14, 0  ;;  %v4533_v14 = vld [vmem:[%s5424_s15 + $0x10] sm:$0xff]  }
 0x770   : > { %3034 = vmax.xlane.f32.xlu1 %v3033_v20  ;;  %v2935_v22 = vpop.f32.mrf.mxu1  ;;  %3031 = vmax.xlane.f32.xlu0 %v3030_v21  ;;  %v2889_v23 = vpop.f32.mrf.mxu0  ;;  %v2200_v20 = vld [vmem:[%s5421_s12 + $0xc] sm:$0xf]  ;;  %v2199_v21 = vld [vmem:[%s5421_s12 + $0x8] sm:$0xf] }
 0x772   : > { %v4338_v24 = vpop.f32.mrf.mxu0  ;;  %v4344_v25 = vpop.f32.mrf.mxu1 }
 0x773   : > { %v3412_v25 = vsel %vm1741_vm3, %v2200_v20, 0 }
 0x774   : > { %v2978_v27 = vpop.f32.mrf.mxu0  ;;  %v3024_v28 = vpop.f32.mrf.mxu1 }
 0x775   : > { %v2979_v29 = vadd.f32 %v2978_v27, %v2201_v13  ;;  %v3025_v31 = vadd.f32 %v3024_v28, %v2201_v13 }
 0x776   : > { %v4349_v32 = vpop.f32.mrf.mxu0  ;;  %v4355_v33 = vpop.f32.mrf.mxu1 }
 0x777   : > { %v3039_v26 = vsel %vm1501_vm2, %v3025_v31, -inf  ;;  %v3036_v34 = vsel %vm1501_vm2, %v2979_v29, -inf }
 0x778   : > { %3040 = vmax.xlane.f32.xlu1 %v3039_v26  ;;  %v3027_v30 = vpop.f32.mrf.mxu1  ;;  %3037 = vmax.xlane.f32.xlu0 %v3036_v34  ;;  %v2981_v35 = vpop.f32.mrf.mxu0 }
 0x77a   : > { %v4350_v6 = vpop.f32.mrf.mxu0  ;;  %v4356_v36 = vpop.f32.mrf.mxu1 }
 0x7f9   : > { %v3035_v37 = vpop.xlane.xlu1 %3034  ;;  %v3032_v38 = vpop.xlane.xlu0 %3031 }
 0x7fa   : > { %v3043_v39 = vsub.f32 %v2933_v17, %v3035_v37  ;;  %v3042_v40 = vsub.f32 %v2887_v16, %v3032_v38  ;;  %v3320_v17 = vsel %vm1741_vm3, %v2198_v4, 0 }
 0x7fc   : > { %v3048_v41 = vmul.f32 1.442695, %v3043_v39  ;;  %v3046_v42 = vmul.f32 1.442695, %v3042_v40 }
 0x7fe   : > { %4554 = vpow2.f32 %v3048_v41 }
 0x7ff   : > { %4556 = vpow2.f32 %v3046_v42 }
 0x801   : > { %v3041_v43 = vpop.xlane.xlu1 %3040  ;;  %v3038_v44 = vpop.xlane.xlu0 %3037 }
 0x802   : > { %v3045_v46 = vsub.f32 %v3025_v31, %v3041_v43  ;;  %v3044_v47 = vsub.f32 %v2979_v29, %v3038_v44  ;;  %v3366_v29 = vsel %vm1741_vm3, %v2199_v21, 0  ;;  %v3924_v21 = vld [vmem:[%s5429_s20] ss:$0 sm:$0xff] }
 0x804   : > { %v3052_v48 = vmul.f32 1.442695, %v3045_v46  ;;  %v3050_v49 = vmul.f32 1.442695, %v3044_v47 }
 0x806   : > { %4558 = vpow2.f32 %v3052_v48 }
 0x807   : > { %4560 = vpow2.f32 %v3050_v49 }
 0x80b   : > { %v4555_v50 = vpop.eup %4554 }
 0x80c   : > { %v4557_v51 = vpop.eup %4556  ;;  %v3057_v52 = vsel %vm1501_vm2, %v4555_v50, 0.0 }
 0x80d   : > { %3058 = vadd.xlane.f32.xlu1 %v3057_v52  ;;  %v3054_v53 = vsel %vm1501_vm2, %v4557_v51, 0.0 }
 0x80e   : > { %3055 = vadd.xlane.f32.xlu0 %v3054_v53 }
 0x813   : > { %v4559_v54 = vpop.eup %4558 }
 0x814   : > { %v4561_v55 = vpop.eup %4560  ;;  %v3063_v56 = vsel %vm1501_vm2, %v4559_v54, 0.0 }
 0x815   : > { %3064 = vadd.xlane.f32.xlu1 %v3063_v56  ;;  %v3060_v57 = vsel %vm1501_vm2, %v4561_v55, 0.0 }
 0x816   : > { %3061 = vadd.xlane.f32.xlu0 %v3060_v57 }
 0x896   : > { %v3059_v58 = vpop.xlane.xlu1 %3058 }
 0x897   : > { %4562 = vrcp.f32 %v3059_v58  ;;  %v3056_v59 = vpop.xlane.xlu0 %3055 }
 0x898   : > { %4564 = vrcp.f32 %v3056_v59 }
 0x89e   : > { %v3065_v60 = vpop.xlane.xlu1 %3064 }
 0x89f   : > { %4566 = vrcp.f32 %v3065_v60  ;;  %v3062_v61 = vpop.xlane.xlu0 %3061 }
 0x8a0   : > { %4568 = vrcp.f32 %v3062_v61 }
 0x8a4   : > { %v4563_v62 = vpop.eup %4562 }
 0x8a5   : > { %v4565_v63 = vpop.eup %4564  ;;  %v3071_v2 = vmul.f32 %v4563_v62, %v4555_v50 }
 0x8a6   : > { %v3070_v5 = vmul.f32 %v4565_v63, %v4557_v51 }
 0x8a7   : > { %v3075_v8 = vpack.c.bf16 %v3071_v2, %v3071_v2 }
 0x8a8   : > { %v3074_v9 = vpack.c.bf16 %v3070_v5, %v3070_v5 }
 0x8a9   : > { %4366 = vmatmul.mubr.msk.bf16.vlgmr.msra.gmra.mxu1 %vm1501_vm2, %v3075_v8 }
 0x8aa   : > { %4360 = vmatmul.mubr.msk.bf16.vlgmr.msra.gmra.mxu0 %vm1501_vm2, %v3074_v9  ;;  %4376 = vmatpush3.bf16.msra.mxu1 %v3224_v10 }
 0x8ab   : > { %4370 = vmatpush3.bf16.msra.mxu0 %v3178_v11  ;;  %4371 = vmatprep.mubr.msk.bf16.mxu0 %vm4653_vm0, %v4652_v1 }
 0x8ac   : > { %v4567_v7 = vpop.eup %4566  ;;  %4377 = vmatprep.mubr.msk.bf16.mxu1 %vm4653_vm0, %v4652_v1  ;;  %4381 = vmatprep.subr.bf16.mxu0 %v4652_v1 }
 0x8ad   : > { %v4569_v12 = vpop.eup %4568  ;;  %v3073_v13 = vmul.f32 %v4567_v7, %v4559_v54  ;;  %4387 = vmatprep.subr.bf16.mxu1 %v4652_v1 }
 0x8ae   : > { %v3072_v15 = vmul.f32 %v4569_v12, %v4561_v55  ;;  %v4530_v12 = vld [vmem:[%s5422_s13 + $0x8] sm:$0xff]  }
 0x8af   : > { %v3077_v16 = vpack.c.bf16 %v3073_v13, %v3073_v13  ;;  %v4531_v13 = vld [vmem:[%s5422_s13] sm:$0xff]  }
 0x8b0   : > { %v3076_v18 = vpack.c.bf16 %v3072_v15, %v3072_v15 }
 0x8b1   : > { %4378 = vmatmul.mubr.msk.bf16.vlgmr.msra.gmra.mxu1 %vm1501_vm2, %v3077_v16 }
 0x8b2   : > { %4372 = vmatmul.mubr.msk.bf16.vlgmr.msra.gmra.mxu0 %vm1501_vm2, %v3076_v18  ;;  %4388 = vmatpush3.bf16.msra.mxu1 %v3320_v17 }
 0x8b3   : > { %4382 = vmatpush3.bf16.msra.mxu0 %v3274_v19  ;;  %4383 = vmatprep.mubr.msk.bf16.mxu0 %vm4653_vm0, %v4652_v1  ;;  %v3923_v19 = vld [vmem:[%s5428_s19] ss:$0 sm:$0xff] }
 0x8b4   : > { %4389 = vmatprep.mubr.msk.bf16.mxu1 %vm4653_vm0, %v4652_v1  ;;  %4393 = vmatprep.subr.bf16.mxu0 %v4652_v1 }
 0x8b5   : > { %4399 = vmatprep.subr.bf16.mxu1 %v4652_v1 }
 0x969   : > { %v3168_v22 = vpop.f32.mrf.mxu1 }
 0x96a   : > { %v3122_v23 = vpop.f32.mrf.mxu0  ;;  %v3267_v24 = vpack.c.bf16 %v3168_v22, %v3168_v22 }
 0x96b   : > { %v3266_v27 = vpack.c.bf16 %v3122_v23, %v3122_v23  ;;  %v4367_v28 = vpop.f32.mrf.mxu1 }
 0x96c   : > { %v4361_v31 = vpop.f32.mrf.mxu0  ;;  %4390 = vmatmul.mubr.msk.bf16.vlgmr.msra.gmra.mxu1 %vm1501_vm2, %v3267_v24  ;;  %v3925_v28 = vld [vmem:[%s5423_s14] ss:$0 sm:$0xff] }
 0x96d   : > { %4384 = vmatmul.mubr.msk.bf16.vlgmr.msra.gmra.mxu0 %vm1501_vm2, %v3266_v27  ;;  %v3171_v32 = vpop.f32.mrf.mxu1  ;;  %4400 = vmatpush3.bf16.msra.mxu1 %v3412_v25  ;;  %v4534_v25 = vld [vmem:[%s5424_s15 + $0x8] sm:$0xff]   ;;  %v4535_v27 = vld [vmem:[%s5424_s15] sm:$0xff]  }
 0x96e   : > { %v3125_v33 = vpop.f32.mrf.mxu0  ;;  %4394 = vmatpush3.bf16.msra.mxu0 %v3366_v29  ;;  %4395 = vmatprep.mubr.msk.bf16.mxu0 %vm4653_vm0, %v4652_v1 }
 0x96f   : > { %v4368_v26 = vpop.f32.mrf.mxu1  ;;  %4401 = vmatprep.mubr.msk.bf16.mxu1 %vm4653_vm0, %v4652_v1  ;;  %4405 = vmatprep.subr.bf16.mxu0 %v4652_v1 }
 0x970   : > { %v4362_v34 = vpop.f32.mrf.mxu0  ;;  %4413 = vmatprep.subr.bf16.mxu1 %v4652_v1 }
 0x971   : > { %v3260_v30 = vpop.f32.mrf.mxu1 }
 0x972   : > { %v3214_v35 = vpop.f32.mrf.mxu0  ;;  %v3269_v6 = vpack.c.bf16 %v3260_v30, %v3260_v30 }
 0x973   : > { %v3268_v36 = vpack.c.bf16 %v3214_v35, %v3214_v35  ;;  %v4379_v37 = vpop.f32.mrf.mxu1 }
 0x974   : > { %v4373_v38 = vpop.f32.mrf.mxu0  ;;  %4402 = vmatmul.mubr.msk.bf16.vlgmr.msra.gmra.mxu1 %vm1501_vm2, %v3269_v6 }
 0x975   : > { %4396 = vmatmul.mubr.msk.bf16.vlgmr.msra.gmra.mxu0 %vm1501_vm2, %v3268_v36  ;;  %v3263_v39 = vpop.f32.mrf.mxu1  ;;  %4421 = vmatprep.mubr.msk.bf16.mxu1 %vm4653_vm0, %v4652_v1 }
 0x976   : > { %v3217_v40 = vpop.f32.mrf.mxu0  ;;  %4409 = vmatprep.mubr.msk.bf16.mxu0 %vm4653_vm0, %v4652_v1  ;;  %4406 = vmatpush3.bf16.msra.mxu0 %v4530_v12 }
 0x977   : > { %v4380_v41 = vpop.f32.mrf.mxu1  ;;  %4407 = vmatprep.subr.bf16.mxu0 %v4652_v1 }
 0x978   : > { %v4374_v42 = vpop.f32.mrf.mxu0 }
 0x97a   : > { %4408 = vmatpush3.bf16.msra.mxu0 %v4531_v13 }
 0xa2c   : > { %v3356_v43 = vpop.f32.mrf.mxu1 }
 0xa2d   : > { %v3310_v44 = vpop.f32.mrf.mxu0  ;;  %v3455_v51 = vsel %vm870_vm1, %v3356_v43, 0.0 }
 0xa2e   : > { %v4391_v46 = vpop.f32.mrf.mxu1  ;;  %v3454_v50 = vsel %vm870_vm1, %v3310_v44, 0.0 }
 0xa2f   : > { %v4385_v47 = vpop.f32.mrf.mxu0  ;;  %v3456_v55 = vadd.f32 %v3455_v51, %v3454_v50  ;;  %v3935_v51 = vld [vmem:[%s5430_s21] ss:$0 sm:$0xff] }
 0xa30   : > { %v3359_v48 = vpop.f32.mrf.mxu1 }
 0xa31   : > { %v3313_v49 = vpop.f32.mrf.mxu0 }
 0xa32   : > { %v4392_v52 = vpop.f32.mrf.mxu1 }
 0xa33   : > { %v4386_v53 = vpop.f32.mrf.mxu0 }
 0xa34   : > { %v3448_v54 = vpop.f32.mrf.mxu1  ;;  %v3936_v53 = vld [vmem:[%s5431_s22] ss:$0 sm:$0xff] }
 0xa35   : > { %v3402_v56 = vpop.f32.mrf.mxu0  ;;  %v3459_v61 = vsel %vm870_vm1, %v3448_v54, 0.0 }
 0xa36   : > { %v3457_v57 = vsel %vm870_vm1, %v3402_v56, 0.0  ;;  %v4403_v58 = vpop.f32.mrf.mxu1 }
 0xa37   : > { %v3458_v59 = vadd.f32 %v3457_v57, %v3456_v55  ;;  %v4397_v60 = vpop.f32.mrf.mxu0 }
 0xa38   : > { %v3451_v62 = vpop.f32.mrf.mxu1 }
 0xa39   : > { %v3460_v63 = vadd.f32 %v3459_v61, %v3458_v59  ;;  %v3405_v0 = vpop.f32.mrf.mxu0 }
 0xa3a   : > { %v4404_v2 = vpop.f32.mrf.mxu1 }
 0xa3b   : > { %v4398_v3 = vpop.f32.mrf.mxu0  ;;  %v3461_v5 = vadd.f32 %v3460_v63, %v5104_v45  ;;  %v4532_v45 = vld [vmem:[%s5424_s15 + $0x18] sm:$0xff]  }
 0xa3c   : > { %4414 = vmatpush3.bf16.msra.mxu1 %v4532_v45 }
 0xa3d   : > { %v3464_v8 = vsel %vm870_vm1, %v3461_v5, 0.0  ;;  %4415 = vmatprep.subr.bf16.mxu1 %v4652_v1 }
 0xa3e   : > { %3465 = vadd.xlane.f32.xlu0 %v3464_v8 }
 0xa40   : > { %4416 = vmatpush3.bf16.msra.mxu1 %v4533_v14 }
 0xa41   : > { %4417 = vmatprep.subr.bf16.mxu1 %v4652_v1 }
 0xa44   : > { %4418 = vmatpush3.bf16.msra.mxu1 %v4534_v25 }
 0xa45   : > { %4419 = vmatprep.subr.bf16.mxu1 %v4652_v1  ;;  %v3929_v1 = vld [vmem:[%s5425_s16] ss:$0 sm:$0xff] }
 0xa48   : > { %4420 = vmatpush3.bf16.msra.mxu1 %v4535_v27 }
 0xac7   : > { %v3466_v9 = vpop.xlane.xlu0 %3465 }
 0xac8   : > { %v3467_v10 = vmul.f32 0.03125, %v3466_v9 }
 0xaca   : > { %v3468_v11 = vsub.f32 %v3461_v5, %v3467_v10 }
 0xacc   : > { %v3469_v7 = vmul.f32 %v3468_v11, %v3468_v11 }
 0xace   : > { %v3470_v4 = vsel %vm870_vm1, %v3469_v7, 0.0 }
 0xacf   : > { %3471 = vadd.xlane.f32.xlu1 %v3470_v4 }
 0xb58   : > { %v3472_v15 = vpop.xlane.xlu1 %3471 }
 0xb59   : > { %v3473_v16 = vmul.f32 0.03125, %v3472_v15 }
 0xb5b   : > { %v3474_v17 = vadd.f32 1e-05, %v3473_v16 }
 0xb5d   : > { %4570 = vrsqrt.f32 %v3474_v17 }
 0xb6a   : > { %v4571_v18 = vpop.eup %4570 }
 0xb6b   : > { %v3476_v20 = vmul.f32 %v4571_v18, %v3468_v11 }
 0xb6d   : > { %v3483_v22 = vmul.f32 %v3923_v19, %v3476_v20 }
 0xb6f   : > { %v3490_v23 = vadd.f32 %v3924_v21, %v3483_v22 }
 0xb71   : > { %v3491_v24 = vpack.c.bf16 %v3490_v23, %v3490_v23 }
 0xb73   : > { %4410 = vmatmul.mubr.msk.bf16.vlgmr.msra.gmra.mxu0 %vm870_vm1, %v3491_v24 }
 0xc33   : > { %v3552_v29 = vpop.f32.mrf.mxu0 }
 0xc34   : > { %v3553_v31 = vadd.f32 %v3925_v28, %v3552_v29 }
 0xc35   : > { %v4411_v32 = vpop.f32.mrf.mxu0 }
 0xc36   : > { %v3558_v33 = vmax.f32 %v3553_v31, 0.0 }
 0xc37   : > { %v3555_v26 = vpop.f32.mrf.mxu0 }
 0xc38   : > { %v3559_v34 = vpack.c.bf16 %v3558_v33, %v3558_v33 }
 0xc39   : > { %v4412_v30 = vpop.f32.mrf.mxu0 }
 0xc3a   : > { %4422 = vmatmul.mubr.msk.bf16.vlgmr.msra.gmra.mxu1 %vm3599_vm4, %v3559_v34 }
 0xcfa   : > { %v3637_v35 = vpop.f32.mrf.mxu1 }
 0xcfb   : > { %v3638_v6 = vadd.f32 %v3929_v1, %v3637_v35 }
 0xcfc   : > { %v4423_v36 = vpop.f32.mrf.mxu1 }
 0xcfd   : > { %v3643_v37 = vadd.f32 %v3638_v6, %v3490_v23 }
 0xcfe   : > { %v3640_v38 = vpop.f32.mrf.mxu1 }
 0xcff   : > { %v3646_v39 = vsel %vm870_vm1, %v3643_v37, 0.0 }
 0xd00   : > { %3647 = vadd.xlane.f32.xlu0 %v3646_v39  ;;  %v4424_v40 = vpop.f32.mrf.mxu1 }
 0xd89   : > { %v3648_v41 = vpop.xlane.xlu0 %3647 }
 0xd8a   : > { %v3649_v42 = vmul.f32 0.03125, %v3648_v41 }
 0xd8c   : > { %v3650_v43 = vsub.f32 %v3643_v37, %v3649_v42 }
 0xd8e   : > { %v3651_v44 = vmul.f32 %v3650_v43, %v3650_v43 }
 0xd90   : > { %v3652_v46 = vsel %vm870_vm1, %v3651_v44, 0.0 }
 0xd91   : > { %3653 = vadd.xlane.f32.xlu1 %v3652_v46 }
 0xe1a   : > { %v3654_v47 = vpop.xlane.xlu1 %3653 }
 0xe1b   : > { %v3655_v48 = vmul.f32 0.03125, %v3654_v47 }
 0xe1d   : > { %v3656_v49 = vadd.f32 1e-05, %v3655_v48 }
 0xe1f   : > { %4572 = vrsqrt.f32 %v3656_v49 }
 0xe2c   : > { %v4573_v50 = vpop.eup %4572 }
 0xe2d   : > { %v3658_v52 = vmul.f32 %v4573_v50, %v3650_v43 }
 0xe2f   : > { %v3665_v54 = vmul.f32 %v3935_v51, %v3658_v52 }
 0xe31   : > { %v3672_v55 = vadd.f32 %v3936_v53, %v3665_v54 }
 0xe33   : > { %3673 = vst.msk [vmem:[%s775_s26] sm:$0xff] %vm870_vm1, %v3672_v55 }
 0xe34   : > { %4587 = shalt.err (!%p4584_p5)
}
 0xe35   : > { %s4588_s28 = scalar_lea.hbm %s3687_s9, 128  ;;  %s4592_s0 = scalar_lea.hbm %s5480_s8, 256 }
 0xe36   : > { %p4589_p6 = scmp.ne.s32.totalorder %s3687_s9, %s4588_s28  ;;  %p4593_p10 = scmp.lt.s32.totalorder %s3687_s9, %s5480_s8 }
 0xe37   : > { %p4594_p11 = scmp.lt.s32.totalorder %s4592_s0, %s4588_s28 }
 0xe38   : > { %p4590_p7 = pnand %p4589_p6, %p4815_p4 }
 0xe39   : > { %p4595_p12 = por %p4594_p11, %p4593_p10 }
 0xe3a   : > { %p4591_p9 = pneg %p4590_p7 }
 0xe3c   : > { %p4596_p13 = pnand %p4595_p12, %p4591_p9 }
 0xe3e   : > { %4599 = shalt.err (!%p4596_p13)
}
 0xe3f   : > { %4425 = dma.vmem_to_hbm [thread:$0]  (%p4815_p4), %s3690_s2, 128, %s3687_s9, %s3675_s10  }
 0xe40 PF: > { %s5481_s5 = sld [smem:[#allocation8_spill]] }
 0xe41   : > { %s5482_s27 = sld [smem:[#allocation5_spill]] }
 0xe46   : > { %p4431_p0 = scmp.ge.s32.totalorder %s5481_s5, 2 }
 0xe47   : > { %s3701_s24 = sand.u32 1, %s5482_s27  }
 0xe48   : > { %p4428_p1 = pnand %p4431_p0, %p4822_p8  ;;  %s3702_s25 = scalar_lea.sflag [#allocation3], %s3701_s24 }
 0xe4a   : > { %p4429_p2 = pneg %p4428_p1 }
 0xe4c   : > { %4625 = dma.done.wait (%p4429_p2), %s3702_s25, 128  }
 0xe4d   : > { %4627 = vsyncadd (%p4429_p2), %s3702_s25, 4294967168  ;;  %s36_s1 = sadd.s32 1, %s5481_s5   ;;  %s5484_s28 = sld [smem:[#allocation6_spill]] }
 0xe4e   : > { %p33_p3 = scmp.ge.s32.totalorder %s36_s1, 4   ;;  %s5485_s24 = sld [smem:[#allocation11_spill]] }
 0xe4f   : > { %s5486_s25 = sld [smem:[#allocation7_spill]]  ;;  %s5488_s4 = smov %s4634_s30 }
 0xe50   : > { %s5487_s5 = sld [smem:[#allocation9_spill]]  ;;  %35 = sbr.rel (!%p33_p3) target bundleno = 17 (0x11), region = 159 }
 0xe53   : > { %s5489_s30 = smov %s5484_s28 }
 0xe55   :  { %3707 = vsyncpa [#allocation3], 1 }
 0xe56   :  { %3709 = vsyncpa [#allocation3 + $0x1], 1 }

</bundles_post_ra>
